<compile_context>
chip_gen: v5e
topology: v5e:2x2
jax: 0.10.0
libtpu: 0.0.40
codegen_flags: <defaults>
</compile_context>

<pallas_src>
import functools

import jax
import jax.numpy as jnp
from jax.experimental import pallas as pl
from jax.experimental.pallas import tpu as pltpu


def encoder_kernel(xp_ref, h0_ref, c0_ref, wih_ref, whh_ref, b_ref,
                   out_ref, hn_ref, cn_ref, pre_ref,
                   *, num_layers, hidden_size, seq_len, batch):
    """Layer-major multi-layer LSTM recurrence, single grid point.

    Shapes (all VMEM resident, gates pre-permuted to (i, f, o, g)):
      xp_ref  : (S, B, 4H)          layer-0 pre-activations x@W_ih0^T + b0 (time-major)
      h0_ref  : (L, B, H)
      c0_ref  : (L, B, H)
      wih_ref : (max(L-1,1), H, 4H) W_ih_l^T for layers 1..L-1
      whh_ref : (L, H, 4H)          W_hh_l^T for all layers
      b_ref   : (max(L-1,1), 1, 4H) b_ih_l + b_hh_l for layers 1..L-1
      out_ref : (S, B, H)           time-major top-layer outputs (+ inter-layer buffer)
      hn_ref  : (L, B, H)
      cn_ref  : (L, B, H)
      pre_ref : (S, B, 4H)          VMEM scratch for batched per-layer projections
    """
    L, H, S, B = num_layers, hidden_size, seq_len, batch

    for l in range(L):
        whh = whh_ref[l]                                    # (H, 4H), hoisted
        h = h0_ref[l]                                       # (B, H)
        c = c0_ref[l]                                       # (B, H)

        if l == 0:
            p_ref = xp_ref                                  # already projected wrapper-side
        else:
            # Batched input projection for all timesteps: ONE MXU matmul
            # (S*B, H) x (H, 4H), off the serial critical path.
            wih = wih_ref[l - 1]                            # (H, 4H)
            bl = b_ref[l - 1]                               # (1, 4H)
            inp = out_ref[...].reshape(S * B, H)            # layer l-1 outputs
            pre_ref[...] = (jnp.dot(inp, wih, preferred_element_type=jnp.float32)
                            + bl).reshape(S, B, 4 * H)
            p_ref = pre_ref

        for t in range(S):
            # Serial path: only the hidden matmul + gate elementwise work.
            gates = p_ref[t] + jnp.dot(h, whh, preferred_element_type=jnp.float32)
            ifo = jax.nn.sigmoid(gates[:, :3 * H])          # (B, 3H) slab: i, f, o
            g_g = jnp.tanh(gates[:, 3 * H:])                # (B, H): g
            i_g = ifo[:, 0 * H:1 * H]
            f_g = ifo[:, 1 * H:2 * H]
            o_g = ifo[:, 2 * H:3 * H]
            c = f_g * c + i_g * g_g
            h = o_g * jnp.tanh(c)
            out_ref[t] = h                                  # full (B, H) tile store

        hn_ref[l] = h
        cn_ref[l] = c


def make_encoder_params(key, feature_size, hidden_size, num_layers):
    """Deterministic init mimicking PyTorch's uniform(-1/sqrt(H), 1/sqrt(H))."""
    H = hidden_size
    bound = 1.0 / (H ** 0.5)
    params = {}
    keys = jax.random.split(key, num_layers * 4)
    ki = 0
    for l in range(num_layers):
        in_sz = feature_size if l == 0 else hidden_size
        params[f"w_ih_l{l}"] = jax.random.uniform(keys[ki], (4 * H, in_sz),
                                                  jnp.float32, -bound, bound); ki += 1
        params[f"w_hh_l{l}"] = jax.random.uniform(keys[ki], (4 * H, H),
                                                  jnp.float32, -bound, bound); ki += 1
        params[f"b_ih_l{l}"] = jax.random.uniform(keys[ki], (4 * H,),
                                                  jnp.float32, -bound, bound); ki += 1
        params[f"b_hh_l{l}"] = jax.random.uniform(keys[ki], (4 * H,),
                                                  jnp.float32, -bound, bound); ki += 1
    return params


def encoder_forward(x, params, num_layers, hidden_size, hidden=None):
    """Matches Encoder.forward: returns (output, h_n, c_n)."""
    B, S, F = x.shape
    H, L = hidden_size, num_layers

    if hidden is None:
        h0 = jnp.zeros((L, B, H), jnp.float32)
        c0 = jnp.zeros((L, B, H), jnp.float32)
    else:
        h0, c0 = hidden

    # Pad batch to the f32 sublane tile (8) so every tile load/store and MXU
    # LHS row block is unmasked.  Padded rows are zero and sliced away after.
    Bp = ((max(B, 8) + 7) // 8) * 8
    pad_b = Bp - B
    if pad_b:
        x_p = jnp.pad(x, ((0, pad_b), (0, 0), (0, 0)))
        h0_p = jnp.pad(h0, ((0, 0), (0, pad_b), (0, 0)))
        c0_p = jnp.pad(c0, ((0, 0), (0, pad_b), (0, 0)))
    else:
        x_p, h0_p, c0_p = x, h0, c0

    # --- wrapper-side weight packing (plain XLA, runs once) -----------------
    def cols_ifog(wt):                     # wt: (in, 4H), col blocks i,f,g,o
        i, f, g, o = jnp.split(wt, 4, axis=1)
        return jnp.concatenate([i, f, o, g], axis=1)   # -> (i, f, o, g)

    def vec_ifog(bv):                      # (4H,) blocks i,f,g,o -> (i,f,o,g)
        i, f, g, o = jnp.split(bv, 4)
        return jnp.concatenate([i, f, o, g])

    # Layer-0 input projection + full layer-0 bias, folded into the wrapper.
    # The (B,S,F)->(S,B,F) transpose fuses into this matmul in XLA.
    w0t = cols_ifog(params["w_ih_l0"].T)                       # (F, 4H)
    b0 = vec_ifog(params["b_ih_l0"] + params["b_hh_l0"])       # (4H,)
    x_tm = jnp.transpose(x_p, (1, 0, 2)).reshape(S * Bp, F)    # (S*Bp, F)
    xp = (jnp.dot(x_tm, w0t) + b0).reshape(S, Bp, 4 * H)       # (S, Bp, 4H)

    # Hidden weights for all layers; input weights / biases for layers >= 1.
    whh = jnp.stack([cols_ifog(params[f"w_hh_l{l}"].T) for l in range(L)])
    if L > 1:
        wih = jnp.stack([cols_ifog(params[f"w_ih_l{l}"].T) for l in range(1, L)])
        b = jnp.stack([vec_ifog(params[f"b_ih_l{l}"] + params[f"b_hh_l{l}"])[None, :]
                       for l in range(1, L)])
    else:
        wih = jnp.zeros((1, H, 4 * H), jnp.float32)            # unused dummy
        b = jnp.zeros((1, 1, 4 * H), jnp.float32)              # unused dummy

    kernel = functools.partial(encoder_kernel, num_layers=L, hidden_size=H,
                               seq_len=S, batch=Bp)

    out_t, hn, cn = pl.pallas_call(
        kernel,
        out_shape=(
            jax.ShapeDtypeStruct((S, Bp, H), jnp.float32),
            jax.ShapeDtypeStruct((L, Bp, H), jnp.float32),
            jax.ShapeDtypeStruct((L, Bp, H), jnp.float32),
        ),
        in_specs=[pl.BlockSpec(memory_space=pltpu.MemorySpace.VMEM)] * 6,
        out_specs=(pl.BlockSpec(memory_space=pltpu.MemorySpace.VMEM),) * 3,
        scratch_shapes=[pltpu.VMEM((S, Bp, 4 * H), jnp.float32)],
    )(xp, h0_p, c0_p, wih, whh, b)

    output = jnp.transpose(out_t[:, :B, :], (1, 0, 2))         # back to batch_first
    return output, hn[:, :B, :], cn[:, :B, :]


def encoder_reference(x, params, num_layers, hidden_size, hidden=None):
    """Pure-JAX reference matching torch.nn.LSTM (batch_first=True) semantics."""
    B, S, _ = x.shape
    H, L = hidden_size, num_layers
    if hidden is None:
        h = [jnp.zeros((B, H), jnp.float32) for _ in range(L)]
        c = [jnp.zeros((B, H), jnp.float32) for _ in range(L)]
    else:
        h0, c0 = hidden
        h = [h0[l] for l in range(L)]
        c = [c0[l] for l in range(L)]
    outs = []
    for t in range(S):
        inp = x[:, t, :]
        for l in range(L):
            gates = (inp @ params[f"w_ih_l{l}"].T + params[f"b_ih_l{l}"]
                     + h[l] @ params[f"w_hh_l{l}"].T + params[f"b_hh_l{l}"])
            i_g = jax.nn.sigmoid(gates[:, 0 * H:1 * H])
            f_g = jax.nn.sigmoid(gates[:, 1 * H:2 * H])
            g_g = jnp.tanh(gates[:, 2 * H:3 * H])
            o_g = jax.nn.sigmoid(gates[:, 3 * H:4 * H])
            c[l] = f_g * c[l] + i_g * g_g
            h[l] = o_g * jnp.tanh(c[l])
            inp = h[l]
        outs.append(h[-1])
    return jnp.stack(outs, axis=1), jnp.stack(h), jnp.stack(c)


if __name__ == "__main__":
    feature_size = 32
    hidden_size = 32
    num_layers = 2
    batch = 4
    seq_len = 8

    key = jax.random.PRNGKey(0)
    k_params, k_x, k_h, k_c = jax.random.split(key, 4)

    params = make_encoder_params(k_params, feature_size, hidden_size, num_layers)
    x = jax.random.normal(k_x, (batch, seq_len, feature_size), jnp.float32)
    h0 = jax.random.normal(k_h, (num_layers, batch, hidden_size), jnp.float32)
    c0 = jax.random.normal(k_c, (num_layers, batch, hidden_size), jnp.float32)

    # Path 1: hidden=None (module default, zero initial state).
    out0, hn0, cn0 = encoder_forward(x, params, num_layers, hidden_size, hidden=None)
    out0, hn0, cn0 = jax.block_until_ready((out0, hn0, cn0))
    ref_out0, ref_hn0, ref_cn0 = encoder_reference(x, params, num_layers, hidden_size, None)

    # Path 2: explicit (h_0, c_0).
    out1, hn1, cn1 = encoder_forward(x, params, num_layers, hidden_size, hidden=(h0, c0))
    out1, hn1, cn1 = jax.block_until_ready((out1, hn1, cn1))
    ref_out1, ref_hn1, ref_cn1 = encoder_reference(x, params, num_layers, hidden_size, (h0, c0))

    assert out0.shape == (batch, seq_len, hidden_size)
    assert hn0.shape == (num_layers, batch, hidden_size)
    assert cn0.shape == (num_layers, batch, hidden_size)
    for got, ref in [(out0, ref_out0), (hn0, ref_hn0), (cn0, ref_cn0),
                     (out1, ref_out1), (hn1, ref_hn1), (cn1, ref_cn1)]:
        assert jnp.allclose(got, ref, atol=1e-4, rtol=1e-4), "mismatch vs reference"

    print("KERNEL_OK")
</pallas_src>

<mosaic_0001>
module attributes {stable_mosaic.version = 11 : i64} {
  func.func @encoder_kernel(%arg0: memref<8x8x128xf32, #tpu.memory_space<vmem>>, %arg1: memref<2x8x32xf32, #tpu.memory_space<vmem>>, %arg2: memref<2x8x32xf32, #tpu.memory_space<vmem>>, %arg3: memref<1x32x128xf32, #tpu.memory_space<vmem>>, %arg4: memref<2x32x128xf32, #tpu.memory_space<vmem>>, %arg5: memref<1x1x128xf32, #tpu.memory_space<vmem>>, %arg6: memref<8x8x32xf32, #tpu.memory_space<vmem>>, %arg7: memref<2x8x32xf32, #tpu.memory_space<vmem>>, %arg8: memref<2x8x32xf32, #tpu.memory_space<vmem>>, %arg9: memref<8x8x128xf32, #tpu.memory_space<vmem>>) attributes {dimension_semantics = [], scalar_prefetch = 0 : i64, scratch_operands = 1 : i64, tpu.core_type = #tpu.core_type<tc>} {
    %c0 = arith.constant 0 : index
    %c0_0 = arith.constant 0 : index
    %c0_1 = arith.constant 0 : index
    %0 = vector.load %arg4[%c0, %c0_0, %c0_1] : memref<2x32x128xf32, #tpu.memory_space<vmem>>, vector<1x32x128xf32>
    %1 = vector.shape_cast %0 : vector<1x32x128xf32> to vector<32x128xf32>
    %c0_2 = arith.constant 0 : index
    %c0_3 = arith.constant 0 : index
    %c0_4 = arith.constant 0 : index
    %2 = vector.load %arg1[%c0_2, %c0_3, %c0_4] : memref<2x8x32xf32, #tpu.memory_space<vmem>>, vector<1x8x32xf32>
    %3 = vector.shape_cast %2 : vector<1x8x32xf32> to vector<8x32xf32>
    %c0_5 = arith.constant 0 : index
    %c0_6 = arith.constant 0 : index
    %c0_7 = arith.constant 0 : index
    %4 = vector.load %arg2[%c0_5, %c0_6, %c0_7] : memref<2x8x32xf32, #tpu.memory_space<vmem>>, vector<1x8x32xf32>
    %5 = vector.shape_cast %4 : vector<1x8x32xf32> to vector<8x32xf32>
    %c0_8 = arith.constant 0 : index
    %c0_9 = arith.constant 0 : index
    %c0_10 = arith.constant 0 : index
    %6 = vector.load %arg0[%c0_8, %c0_9, %c0_10] : memref<8x8x128xf32, #tpu.memory_space<vmem>>, vector<1x8x128xf32>
    %7 = vector.shape_cast %6 : vector<1x8x128xf32> to vector<8x128xf32>
    %cst = arith.constant dense<0.000000e+00> : vector<8x128xf32>
    %8 = tpu.matmul %3, %1, %cst {dimension_numbers = #tpu.dot_dimension_numbers<[1], [0], [0], [1], [0, 0, 1, 1], [], []>} : vector<8x32xf32>, vector<32x128xf32>, vector<8x128xf32> -> vector<8x128xf32>
    %9 = arith.addf %7, %8 : vector<8x128xf32>
    %10 = vector.extract_strided_slice %9 {offsets = [0, 0], sizes = [8, 96], strides = [1, 1]} : vector<8x128xf32> to vector<8x96xf32>
    %11 = arith.negf %10 : vector<8x96xf32>
    %12 = math.exp %11 : vector<8x96xf32>
    %cst_11 = arith.constant 1.000000e+00 : f32
    %13 = vector.broadcast %cst_11 : f32 to vector<8x96xf32>
    %14 = arith.addf %13, %12 : vector<8x96xf32>
    %15 = arith.divf %13, %14 : vector<8x96xf32>
    %16 = vector.extract_strided_slice %9 {offsets = [0, 96], sizes = [8, 32], strides = [1, 1]} : vector<8x128xf32> to vector<8x32xf32>
    %17 = math.tanh %16 : vector<8x32xf32>
    %18 = vector.extract_strided_slice %15 {offsets = [0, 0], sizes = [8, 32], strides = [1, 1]} : vector<8x96xf32> to vector<8x32xf32>
    %19 = vector.extract_strided_slice %15 {offsets = [0, 32], sizes = [8, 32], strides = [1, 1]} : vector<8x96xf32> to vector<8x32xf32>
    %20 = vector.extract_strided_slice %15 {offsets = [0, 64], sizes = [8, 32], strides = [1, 1]} : vector<8x96xf32> to vector<8x32xf32>
    %21 = arith.mulf %19, %5 : vector<8x32xf32>
    %22 = arith.mulf %18, %17 : vector<8x32xf32>
    %23 = arith.addf %21, %22 : vector<8x32xf32>
    %24 = math.tanh %23 : vector<8x32xf32>
    %25 = arith.mulf %20, %24 : vector<8x32xf32>
    %c0_12 = arith.constant 0 : index
    %c0_13 = arith.constant 0 : index
    %c0_14 = arith.constant 0 : index
    %26 = vector.load %arg6[%c0_12, %c0_13, %c0_14] : memref<8x8x32xf32, #tpu.memory_space<vmem>>, vector<1x8x32xf32>
    %27 = vector.shape_cast %26 : vector<1x8x32xf32> to vector<8x32xf32>
    %28 = vector.shape_cast %25 : vector<8x32xf32> to vector<1x8x32xf32>
    tpu.vector_store %arg6[%c0_12, %c0_13, %c0_14], %28 {strides = array<i32>} : memref<8x8x32xf32, #tpu.memory_space<vmem>>, vector<1x8x32xf32>,
    %c1 = arith.constant 1 : index
    %c0_15 = arith.constant 0 : index
    %c0_16 = arith.constant 0 : index
    %29 = vector.load %arg0[%c1, %c0_15, %c0_16] : memref<8x8x128xf32, #tpu.memory_space<vmem>>, vector<1x8x128xf32>
    %30 = vector.shape_cast %29 : vector<1x8x128xf32> to vector<8x128xf32>
    %cst_17 = arith.constant dense<0.000000e+00> : vector<8x128xf32>
    %31 = tpu.matmul %25, %1, %cst_17 {dimension_numbers = #tpu.dot_dimension_numbers<[1], [0], [0], [1], [0, 0, 1, 1], [], []>} : vector<8x32xf32>, vector<32x128xf32>, vector<8x128xf32> -> vector<8x128xf32>
    %32 = arith.addf %30, %31 : vector<8x128xf32>
    %33 = vector.extract_strided_slice %32 {offsets = [0, 0], sizes = [8, 96], strides = [1, 1]} : vector<8x128xf32> to vector<8x96xf32>
    %34 = arith.negf %33 : vector<8x96xf32>
    %35 = math.exp %34 : vector<8x96xf32>
    %cst_18 = arith.constant 1.000000e+00 : f32
    %36 = vector.broadcast %cst_18 : f32 to vector<8x96xf32>
    %37 = arith.addf %36, %35 : vector<8x96xf32>
    %38 = arith.divf %36, %37 : vector<8x96xf32>
    %39 = vector.extract_strided_slice %32 {offsets = [0, 96], sizes = [8, 32], strides = [1, 1]} : vector<8x128xf32> to vector<8x32xf32>
    %40 = math.tanh %39 : vector<8x32xf32>
    %41 = vector.extract_strided_slice %38 {offsets = [0, 0], sizes = [8, 32], strides = [1, 1]} : vector<8x96xf32> to vector<8x32xf32>
    %42 = vector.extract_strided_slice %38 {offsets = [0, 32], sizes = [8, 32], strides = [1, 1]} : vector<8x96xf32> to vector<8x32xf32>
    %43 = vector.extract_strided_slice %38 {offsets = [0, 64], sizes = [8, 32], strides = [1, 1]} : vector<8x96xf32> to vector<8x32xf32>
    %44 = arith.mulf %42, %23 : vector<8x32xf32>
    %45 = arith.mulf %41, %40 : vector<8x32xf32>
    %46 = arith.addf %44, %45 : vector<8x32xf32>
    %47 = math.tanh %46 : vector<8x32xf32>
    %48 = arith.mulf %43, %47 : vector<8x32xf32>
    %c1_19 = arith.constant 1 : index
    %c0_20 = arith.constant 0 : index
    %c0_21 = arith.constant 0 : index
    %49 = vector.load %arg6[%c1_19, %c0_20, %c0_21] : memref<8x8x32xf32, #tpu.memory_space<vmem>>, vector<1x8x32xf32>
    %50 = vector.shape_cast %49 : vector<1x8x32xf32> to vector<8x32xf32>
    %51 = vector.shape_cast %48 : vector<8x32xf32> to vector<1x8x32xf32>
    tpu.vector_store %arg6[%c1_19, %c0_20, %c0_21], %51 {strides = array<i32>} : memref<8x8x32xf32, #tpu.memory_space<vmem>>, vector<1x8x32xf32>,
    %c2 = arith.constant 2 : index
    %c0_22 = arith.constant 0 : index
    %c0_23 = arith.constant 0 : index
    %52 = vector.load %arg0[%c2, %c0_22, %c0_23] : memref<8x8x128xf32, #tpu.memory_space<vmem>>, vector<1x8x128xf32>
    %53 = vector.shape_cast %52 : vector<1x8x128xf32> to vector<8x128xf32>
    %cst_24 = arith.constant dense<0.000000e+00> : vector<8x128xf32>
    %54 = tpu.matmul %48, %1, %cst_24 {dimension_numbers = #tpu.dot_dimension_numbers<[1], [0], [0], [1], [0, 0, 1, 1], [], []>} : vector<8x32xf32>, vector<32x128xf32>, vector<8x128xf32> -> vector<8x128xf32>
    %55 = arith.addf %53, %54 : vector<8x128xf32>
    %56 = vector.extract_strided_slice %55 {offsets = [0, 0], sizes = [8, 96], strides = [1, 1]} : vector<8x128xf32> to vector<8x96xf32>
    %57 = arith.negf %56 : vector<8x96xf32>
    %58 = math.exp %57 : vector<8x96xf32>
    %cst_25 = arith.constant 1.000000e+00 : f32
    %59 = vector.broadcast %cst_25 : f32 to vector<8x96xf32>
    %60 = arith.addf %59, %58 : vector<8x96xf32>
    %61 = arith.divf %59, %60 : vector<8x96xf32>
    %62 = vector.extract_strided_slice %55 {offsets = [0, 96], sizes = [8, 32], strides = [1, 1]} : vector<8x128xf32> to vector<8x32xf32>
    %63 = math.tanh %62 : vector<8x32xf32>
    %64 = vector.extract_strided_slice %61 {offsets = [0, 0], sizes = [8, 32], strides = [1, 1]} : vector<8x96xf32> to vector<8x32xf32>
    %65 = vector.extract_strided_slice %61 {offsets = [0, 32], sizes = [8, 32], strides = [1, 1]} : vector<8x96xf32> to vector<8x32xf32>
    %66 = vector.extract_strided_slice %61 {offsets = [0, 64], sizes = [8, 32], strides = [1, 1]} : vector<8x96xf32> to vector<8x32xf32>
    %67 = arith.mulf %65, %46 : vector<8x32xf32>
    %68 = arith.mulf %64, %63 : vector<8x32xf32>
    %69 = arith.addf %67, %68 : vector<8x32xf32>
    %70 = math.tanh %69 : vector<8x32xf32>
    %71 = arith.mulf %66, %70 : vector<8x32xf32>
    %c2_26 = arith.constant 2 : index
    %c0_27 = arith.constant 0 : index
    %c0_28 = arith.constant 0 : index
    %72 = vector.load %arg6[%c2_26, %c0_27, %c0_28] : memref<8x8x32xf32, #tpu.memory_space<vmem>>, vector<1x8x32xf32>
    %73 = vector.shape_cast %72 : vector<1x8x32xf32> to vector<8x32xf32>
    %74 = vector.shape_cast %71 : vector<8x32xf32> to vector<1x8x32xf32>
    tpu.vector_store %arg6[%c2_26, %c0_27, %c0_28], %74 {strides = array<i32>} : memref<8x8x32xf32, #tpu.memory_space<vmem>>, vector<1x8x32xf32>,
    %c3 = arith.constant 3 : index
    %c0_29 = arith.constant 0 : index
    %c0_30 = arith.constant 0 : index
    %75 = vector.load %arg0[%c3, %c0_29, %c0_30] : memref<8x8x128xf32, #tpu.memory_space<vmem>>, vector<1x8x128xf32>
    %76 = vector.shape_cast %75 : vector<1x8x128xf32> to vector<8x128xf32>
    %cst_31 = arith.constant dense<0.000000e+00> : vector<8x128xf32>
    %77 = tpu.matmul %71, %1, %cst_31 {dimension_numbers = #tpu.dot_dimension_numbers<[1], [0], [0], [1], [0, 0, 1, 1], [], []>} : vector<8x32xf32>, vector<32x128xf32>, vector<8x128xf32> -> vector<8x128xf32>
    %78 = arith.addf %76, %77 : vector<8x128xf32>
    %79 = vector.extract_strided_slice %78 {offsets = [0, 0], sizes = [8, 96], strides = [1, 1]} : vector<8x128xf32> to vector<8x96xf32>
    %80 = arith.negf %79 : vector<8x96xf32>
    %81 = math.exp %80 : vector<8x96xf32>
    %cst_32 = arith.constant 1.000000e+00 : f32
    %82 = vector.broadcast %cst_32 : f32 to vector<8x96xf32>
    %83 = arith.addf %82, %81 : vector<8x96xf32>
    %84 = arith.divf %82, %83 : vector<8x96xf32>
    %85 = vector.extract_strided_slice %78 {offsets = [0, 96], sizes = [8, 32], strides = [1, 1]} : vector<8x128xf32> to vector<8x32xf32>
    %86 = math.tanh %85 : vector<8x32xf32>
    %87 = vector.extract_strided_slice %84 {offsets = [0, 0], sizes = [8, 32], strides = [1, 1]} : vector<8x96xf32> to vector<8x32xf32>
    %88 = vector.extract_strided_slice %84 {offsets = [0, 32], sizes = [8, 32], strides = [1, 1]} : vector<8x96xf32> to vector<8x32xf32>
    %89 = vector.extract_strided_slice %84 {offsets = [0, 64], sizes = [8, 32], strides = [1, 1]} : vector<8x96xf32> to vector<8x32xf32>
    %90 = arith.mulf %88, %69 : vector<8x32xf32>
    %91 = arith.mulf %87, %86 : vector<8x32xf32>
    %92 = arith.addf %90, %91 : vector<8x32xf32>
    %93 = math.tanh %92 : vector<8x32xf32>
    %94 = arith.mulf %89, %93 : vector<8x32xf32>
    %c3_33 = arith.constant 3 : index
    %c0_34 = arith.constant 0 : index
    %c0_35 = arith.constant 0 : index
    %95 = vector.load %arg6[%c3_33, %c0_34, %c0_35] : memref<8x8x32xf32, #tpu.memory_space<vmem>>, vector<1x8x32xf32>
    %96 = vector.shape_cast %95 : vector<1x8x32xf32> to vector<8x32xf32>
    %97 = vector.shape_cast %94 : vector<8x32xf32> to vector<1x8x32xf32>
    tpu.vector_store %arg6[%c3_33, %c0_34, %c0_35], %97 {strides = array<i32>} : memref<8x8x32xf32, #tpu.memory_space<vmem>>, vector<1x8x32xf32>,
    %c4 = arith.constant 4 : index
    %c0_36 = arith.constant 0 : index
    %c0_37 = arith.constant 0 : index
    %98 = vector.load %arg0[%c4, %c0_36, %c0_37] : memref<8x8x128xf32, #tpu.memory_space<vmem>>, vector<1x8x128xf32>
    %99 = vector.shape_cast %98 : vector<1x8x128xf32> to vector<8x128xf32>
    %cst_38 = arith.constant dense<0.000000e+00> : vector<8x128xf32>
    %100 = tpu.matmul %94, %1, %cst_38 {dimension_numbers = #tpu.dot_dimension_numbers<[1], [0], [0], [1], [0, 0, 1, 1], [], []>} : vector<8x32xf32>, vector<32x128xf32>, vector<8x128xf32> -> vector<8x128xf32>
    %101 = arith.addf %99, %100 : vector<8x128xf32>
    %102 = vector.extract_strided_slice %101 {offsets = [0, 0], sizes = [8, 96], strides = [1, 1]} : vector<8x128xf32> to vector<8x96xf32>
    %103 = arith.negf %102 : vector<8x96xf32>
    %104 = math.exp %103 : vector<8x96xf32>
    %cst_39 = arith.constant 1.000000e+00 : f32
    %105 = vector.broadcast %cst_39 : f32 to vector<8x96xf32>
    %106 = arith.addf %105, %104 : vector<8x96xf32>
    %107 = arith.divf %105, %106 : vector<8x96xf32>
    %108 = vector.extract_strided_slice %101 {offsets = [0, 96], sizes = [8, 32], strides = [1, 1]} : vector<8x128xf32> to vector<8x32xf32>
    %109 = math.tanh %108 : vector<8x32xf32>
    %110 = vector.extract_strided_slice %107 {offsets = [0, 0], sizes = [8, 32], strides = [1, 1]} : vector<8x96xf32> to vector<8x32xf32>
    %111 = vector.extract_strided_slice %107 {offsets = [0, 32], sizes = [8, 32], strides = [1, 1]} : vector<8x96xf32> to vector<8x32xf32>
    %112 = vector.extract_strided_slice %107 {offsets = [0, 64], sizes = [8, 32], strides = [1, 1]} : vector<8x96xf32> to vector<8x32xf32>
    %113 = arith.mulf %111, %92 : vector<8x32xf32>
    %114 = arith.mulf %110, %109 : vector<8x32xf32>
    %115 = arith.addf %113, %114 : vector<8x32xf32>
    %116 = math.tanh %115 : vector<8x32xf32>
    %117 = arith.mulf %112, %116 : vector<8x32xf32>
    %c4_40 = arith.constant 4 : index
    %c0_41 = arith.constant 0 : index
    %c0_42 = arith.constant 0 : index
    %118 = vector.load %arg6[%c4_40, %c0_41, %c0_42] : memref<8x8x32xf32, #tpu.memory_space<vmem>>, vector<1x8x32xf32>
    %119 = vector.shape_cast %118 : vector<1x8x32xf32> to vector<8x32xf32>
    %120 = vector.shape_cast %117 : vector<8x32xf32> to vector<1x8x32xf32>
    tpu.vector_store %arg6[%c4_40, %c0_41, %c0_42], %120 {strides = array<i32>} : memref<8x8x32xf32, #tpu.memory_space<vmem>>, vector<1x8x32xf32>,
    %c5 = arith.constant 5 : index
    %c0_43 = arith.constant 0 : index
    %c0_44 = arith.constant 0 : index
    %121 = vector.load %arg0[%c5, %c0_43, %c0_44] : memref<8x8x128xf32, #tpu.memory_space<vmem>>, vector<1x8x128xf32>
    %122 = vector.shape_cast %121 : vector<1x8x128xf32> to vector<8x128xf32>
    %cst_45 = arith.constant dense<0.000000e+00> : vector<8x128xf32>
    %123 = tpu.matmul %117, %1, %cst_45 {dimension_numbers = #tpu.dot_dimension_numbers<[1], [0], [0], [1], [0, 0, 1, 1], [], []>} : vector<8x32xf32>, vector<32x128xf32>, vector<8x128xf32> -> vector<8x128xf32>
    %124 = arith.addf %122, %123 : vector<8x128xf32>
    %125 = vector.extract_strided_slice %124 {offsets = [0, 0], sizes = [8, 96], strides = [1, 1]} : vector<8x128xf32> to vector<8x96xf32>
    %126 = arith.negf %125 : vector<8x96xf32>
    %127 = math.exp %126 : vector<8x96xf32>
    %cst_46 = arith.constant 1.000000e+00 : f32
    %128 = vector.broadcast %cst_46 : f32 to vector<8x96xf32>
    %129 = arith.addf %128, %127 : vector<8x96xf32>
    %130 = arith.divf %128, %129 : vector<8x96xf32>
    %131 = vector.extract_strided_slice %124 {offsets = [0, 96], sizes = [8, 32], strides = [1, 1]} : vector<8x128xf32> to vector<8x32xf32>
    %132 = math.tanh %131 : vector<8x32xf32>
    %133 = vector.extract_strided_slice %130 {offsets = [0, 0], sizes = [8, 32], strides = [1, 1]} : vector<8x96xf32> to vector<8x32xf32>
    %134 = vector.extract_strided_slice %130 {offsets = [0, 32], sizes = [8, 32], strides = [1, 1]} : vector<8x96xf32> to vector<8x32xf32>
    %135 = vector.extract_strided_slice %130 {offsets = [0, 64], sizes = [8, 32], strides = [1, 1]} : vector<8x96xf32> to vector<8x32xf32>
    %136 = arith.mulf %134, %115 : vector<8x32xf32>
    %137 = arith.mulf %133, %132 : vector<8x32xf32>
    %138 = arith.addf %136, %137 : vector<8x32xf32>
    %139 = math.tanh %138 : vector<8x32xf32>
    %140 = arith.mulf %135, %139 : vector<8x32xf32>
    %c5_47 = arith.constant 5 : index
    %c0_48 = arith.constant 0 : index
    %c0_49 = arith.constant 0 : index
    %141 = vector.load %arg6[%c5_47, %c0_48, %c0_49] : memref<8x8x32xf32, #tpu.memory_space<vmem>>, vector<1x8x32xf32>
    %142 = vector.shape_cast %141 : vector<1x8x32xf32> to vector<8x32xf32>
    %143 = vector.shape_cast %140 : vector<8x32xf32> to vector<1x8x32xf32>
    tpu.vector_store %arg6[%c5_47, %c0_48, %c0_49], %143 {strides = array<i32>} : memref<8x8x32xf32, #tpu.memory_space<vmem>>, vector<1x8x32xf32>,
    %c6 = arith.constant 6 : index
    %c0_50 = arith.constant 0 : index
    %c0_51 = arith.constant 0 : index
    %144 = vector.load %arg0[%c6, %c0_50, %c0_51] : memref<8x8x128xf32, #tpu.memory_space<vmem>>, vector<1x8x128xf32>
    %145 = vector.shape_cast %144 : vector<1x8x128xf32> to vector<8x128xf32>
    %cst_52 = arith.constant dense<0.000000e+00> : vector<8x128xf32>
    %146 = tpu.matmul %140, %1, %cst_52 {dimension_numbers = #tpu.dot_dimension_numbers<[1], [0], [0], [1], [0, 0, 1, 1], [], []>} : vector<8x32xf32>, vector<32x128xf32>, vector<8x128xf32> -> vector<8x128xf32>
    %147 = arith.addf %145, %146 : vector<8x128xf32>
    %148 = vector.extract_strided_slice %147 {offsets = [0, 0], sizes = [8, 96], strides = [1, 1]} : vector<8x128xf32> to vector<8x96xf32>
    %149 = arith.negf %148 : vector<8x96xf32>
    %150 = math.exp %149 : vector<8x96xf32>
    %cst_53 = arith.constant 1.000000e+00 : f32
    %151 = vector.broadcast %cst_53 : f32 to vector<8x96xf32>
    %152 = arith.addf %151, %150 : vector<8x96xf32>
    %153 = arith.divf %151, %152 : vector<8x96xf32>
    %154 = vector.extract_strided_slice %147 {offsets = [0, 96], sizes = [8, 32], strides = [1, 1]} : vector<8x128xf32> to vector<8x32xf32>
    %155 = math.tanh %154 : vector<8x32xf32>
    %156 = vector.extract_strided_slice %153 {offsets = [0, 0], sizes = [8, 32], strides = [1, 1]} : vector<8x96xf32> to vector<8x32xf32>
    %157 = vector.extract_strided_slice %153 {offsets = [0, 32], sizes = [8, 32], strides = [1, 1]} : vector<8x96xf32> to vector<8x32xf32>
    %158 = vector.extract_strided_slice %153 {offsets = [0, 64], sizes = [8, 32], strides = [1, 1]} : vector<8x96xf32> to vector<8x32xf32>
    %159 = arith.mulf %157, %138 : vector<8x32xf32>
    %160 = arith.mulf %156, %155 : vector<8x32xf32>
    %161 = arith.addf %159, %160 : vector<8x32xf32>
    %162 = math.tanh %161 : vector<8x32xf32>
    %163 = arith.mulf %158, %162 : vector<8x32xf32>
    %c6_54 = arith.constant 6 : index
    %c0_55 = arith.constant 0 : index
    %c0_56 = arith.constant 0 : index
    %164 = vector.load %arg6[%c6_54, %c0_55, %c0_56] : memref<8x8x32xf32, #tpu.memory_space<vmem>>, vector<1x8x32xf32>
    %165 = vector.shape_cast %164 : vector<1x8x32xf32> to vector<8x32xf32>
    %166 = vector.shape_cast %163 : vector<8x32xf32> to vector<1x8x32xf32>
    tpu.vector_store %arg6[%c6_54, %c0_55, %c0_56], %166 {strides = array<i32>} : memref<8x8x32xf32, #tpu.memory_space<vmem>>, vector<1x8x32xf32>,
    %c7 = arith.constant 7 : index
    %c0_57 = arith.constant 0 : index
    %c0_58 = arith.constant 0 : index
    %167 = vector.load %arg0[%c7, %c0_57, %c0_58] : memref<8x8x128xf32, #tpu.memory_space<vmem>>, vector<1x8x128xf32>
    %168 = vector.shape_cast %167 : vector<1x8x128xf32> to vector<8x128xf32>
    %cst_59 = arith.constant dense<0.000000e+00> : vector<8x128xf32>
    %169 = tpu.matmul %163, %1, %cst_59 {dimension_numbers = #tpu.dot_dimension_numbers<[1], [0], [0], [1], [0, 0, 1, 1], [], []>} : vector<8x32xf32>, vector<32x128xf32>, vector<8x128xf32> -> vector<8x128xf32>
    %170 = arith.addf %168, %169 : vector<8x128xf32>
    %171 = vector.extract_strided_slice %170 {offsets = [0, 0], sizes = [8, 96], strides = [1, 1]} : vector<8x128xf32> to vector<8x96xf32>
    %172 = arith.negf %171 : vector<8x96xf32>
    %173 = math.exp %172 : vector<8x96xf32>
    %cst_60 = arith.constant 1.000000e+00 : f32
    %174 = vector.broadcast %cst_60 : f32 to vector<8x96xf32>
    %175 = arith.addf %174, %173 : vector<8x96xf32>
    %176 = arith.divf %174, %175 : vector<8x96xf32>
    %177 = vector.extract_strided_slice %170 {offsets = [0, 96], sizes = [8, 32], strides = [1, 1]} : vector<8x128xf32> to vector<8x32xf32>
    %178 = math.tanh %177 : vector<8x32xf32>
    %179 = vector.extract_strided_slice %176 {offsets = [0, 0], sizes = [8, 32], strides = [1, 1]} : vector<8x96xf32> to vector<8x32xf32>
    %180 = vector.extract_strided_slice %176 {offsets = [0, 32], sizes = [8, 32], strides = [1, 1]} : vector<8x96xf32> to vector<8x32xf32>
    %181 = vector.extract_strided_slice %176 {offsets = [0, 64], sizes = [8, 32], strides = [1, 1]} : vector<8x96xf32> to vector<8x32xf32>
    %182 = arith.mulf %180, %161 : vector<8x32xf32>
    %183 = arith.mulf %179, %178 : vector<8x32xf32>
    %184 = arith.addf %182, %183 : vector<8x32xf32>
    %185 = math.tanh %184 : vector<8x32xf32>
    %186 = arith.mulf %181, %185 : vector<8x32xf32>
    %c7_61 = arith.constant 7 : index
    %c0_62 = arith.constant 0 : index
    %c0_63 = arith.constant 0 : index
    %187 = vector.load %arg6[%c7_61, %c0_62, %c0_63] : memref<8x8x32xf32, #tpu.memory_space<vmem>>, vector<1x8x32xf32>
    %188 = vector.shape_cast %187 : vector<1x8x32xf32> to vector<8x32xf32>
    %189 = vector.shape_cast %186 : vector<8x32xf32> to vector<1x8x32xf32>
    tpu.vector_store %arg6[%c7_61, %c0_62, %c0_63], %189 {strides = array<i32>} : memref<8x8x32xf32, #tpu.memory_space<vmem>>, vector<1x8x32xf32>,
    %c0_64 = arith.constant 0 : index
    %c0_65 = arith.constant 0 : index
    %c0_66 = arith.constant 0 : index
    %190 = vector.load %arg7[%c0_64, %c0_65, %c0_66] : memref<2x8x32xf32, #tpu.memory_space<vmem>>, vector<1x8x32xf32>
    %191 = vector.shape_cast %190 : vector<1x8x32xf32> to vector<8x32xf32>
    %192 = vector.shape_cast %186 : vector<8x32xf32> to vector<1x8x32xf32>
    tpu.vector_store %arg7[%c0_64, %c0_65, %c0_66], %192 {strides = array<i32>} : memref<2x8x32xf32, #tpu.memory_space<vmem>>, vector<1x8x32xf32>,
    %c0_67 = arith.constant 0 : index
    %c0_68 = arith.constant 0 : index
    %c0_69 = arith.constant 0 : index
    %193 = vector.load %arg8[%c0_67, %c0_68, %c0_69] : memref<2x8x32xf32, #tpu.memory_space<vmem>>, vector<1x8x32xf32>
    %194 = vector.shape_cast %193 : vector<1x8x32xf32> to vector<8x32xf32>
    %195 = vector.shape_cast %184 : vector<8x32xf32> to vector<1x8x32xf32>
    tpu.vector_store %arg8[%c0_67, %c0_68, %c0_69], %195 {strides = array<i32>} : memref<2x8x32xf32, #tpu.memory_space<vmem>>, vector<1x8x32xf32>,
    %c1_70 = arith.constant 1 : index
    %c0_71 = arith.constant 0 : index
    %c0_72 = arith.constant 0 : index
    %196 = vector.load %arg4[%c1_70, %c0_71, %c0_72] : memref<2x32x128xf32, #tpu.memory_space<vmem>>, vector<1x32x128xf32>
    %197 = vector.shape_cast %196 : vector<1x32x128xf32> to vector<32x128xf32>
    %c1_73 = arith.constant 1 : index
    %c0_74 = arith.constant 0 : index
    %c0_75 = arith.constant 0 : index
    %198 = vector.load %arg1[%c1_73, %c0_74, %c0_75] : memref<2x8x32xf32, #tpu.memory_space<vmem>>, vector<1x8x32xf32>
    %199 = vector.shape_cast %198 : vector<1x8x32xf32> to vector<8x32xf32>
    %c1_76 = arith.constant 1 : index
    %c0_77 = arith.constant 0 : index
    %c0_78 = arith.constant 0 : index
    %200 = vector.load %arg2[%c1_76, %c0_77, %c0_78] : memref<2x8x32xf32, #tpu.memory_space<vmem>>, vector<1x8x32xf32>
    %201 = vector.shape_cast %200 : vector<1x8x32xf32> to vector<8x32xf32>
    %c0_79 = arith.constant 0 : index
    %c0_80 = arith.constant 0 : index
    %c0_81 = arith.constant 0 : index
    %202 = vector.load %arg3[%c0_79, %c0_80, %c0_81] : memref<1x32x128xf32, #tpu.memory_space<vmem>>, vector<1x32x128xf32>
    %203 = vector.shape_cast %202 : vector<1x32x128xf32> to vector<32x128xf32>
    %c0_82 = arith.constant 0 : index
    %c0_83 = arith.constant 0 : index
    %c0_84 = arith.constant 0 : index
    %204 = vector.load %arg5[%c0_82, %c0_83, %c0_84] : memref<1x1x128xf32, #tpu.memory_space<vmem>>, vector<1x1x128xf32>
    %205 = vector.shape_cast %204 : vector<1x1x128xf32> to vector<1x128xf32>
    %c0_85 = arith.constant 0 : index
    %c0_86 = arith.constant 0 : index
    %c0_87 = arith.constant 0 : index
    %206 = vector.load %arg6[%c0_85, %c0_86, %c0_87] : memref<8x8x32xf32, #tpu.memory_space<vmem>>, vector<8x8x32xf32>
    %207 = vector.shape_cast %206 : vector<8x8x32xf32> to vector<64x32xf32>
    %cst_88 = arith.constant dense<0.000000e+00> : vector<64x128xf32>
    %208 = tpu.matmul %207, %203, %cst_88 {dimension_numbers = #tpu.dot_dimension_numbers<[1], [0], [0], [1], [0, 0, 1, 1], [], []>} : vector<64x32xf32>, vector<32x128xf32>, vector<64x128xf32> -> vector<64x128xf32>
    %209 = vector.broadcast %205 : vector<1x128xf32> to vector<64x128xf32>
    %210 = arith.addf %208, %209 : vector<64x128xf32>
    %211 = vector.shape_cast %210 : vector<64x128xf32> to vector<8x8x128xf32>
    %c0_89 = arith.constant 0 : index
    %c0_90 = arith.constant 0 : index
    %c0_91 = arith.constant 0 : index
    %212 = vector.load %arg9[%c0_89, %c0_90, %c0_91] : memref<8x8x128xf32, #tpu.memory_space<vmem>>, vector<8x8x128xf32>
    tpu.vector_store %arg9[%c0_89, %c0_90, %c0_91], %211 {strides = array<i32>} : memref<8x8x128xf32, #tpu.memory_space<vmem>>, vector<8x8x128xf32>,
    %c0_92 = arith.constant 0 : index
    %c0_93 = arith.constant 0 : index
    %c0_94 = arith.constant 0 : index
    %213 = vector.load %arg9[%c0_92, %c0_93, %c0_94] : memref<8x8x128xf32, #tpu.memory_space<vmem>>, vector<1x8x128xf32>
    %214 = vector.shape_cast %213 : vector<1x8x128xf32> to vector<8x128xf32>
    %cst_95 = arith.constant dense<0.000000e+00> : vector<8x128xf32>
    %215 = tpu.matmul %199, %197, %cst_95 {dimension_numbers = #tpu.dot_dimension_numbers<[1], [0], [0], [1], [0, 0, 1, 1], [], []>} : vector<8x32xf32>, vector<32x128xf32>, vector<8x128xf32> -> vector<8x128xf32>
    %216 = arith.addf %214, %215 : vector<8x128xf32>
    %217 = vector.extract_strided_slice %216 {offsets = [0, 0], sizes = [8, 96], strides = [1, 1]} : vector<8x128xf32> to vector<8x96xf32>
    %218 = arith.negf %217 : vector<8x96xf32>
    %219 = math.exp %218 : vector<8x96xf32>
    %cst_96 = arith.constant 1.000000e+00 : f32
    %220 = vector.broadcast %cst_96 : f32 to vector<8x96xf32>
    %221 = arith.addf %220, %219 : vector<8x96xf32>
    %222 = arith.divf %220, %221 : vector<8x96xf32>
    %223 = vector.extract_strided_slice %216 {offsets = [0, 96], sizes = [8, 32], strides = [1, 1]} : vector<8x128xf32> to vector<8x32xf32>
    %224 = math.tanh %223 : vector<8x32xf32>
    %225 = vector.extract_strided_slice %222 {offsets = [0, 0], sizes = [8, 32], strides = [1, 1]} : vector<8x96xf32> to vector<8x32xf32>
    %226 = vector.extract_strided_slice %222 {offsets = [0, 32], sizes = [8, 32], strides = [1, 1]} : vector<8x96xf32> to vector<8x32xf32>
    %227 = vector.extract_strided_slice %222 {offsets = [0, 64], sizes = [8, 32], strides = [1, 1]} : vector<8x96xf32> to vector<8x32xf32>
    %228 = arith.mulf %226, %201 : vector<8x32xf32>
    %229 = arith.mulf %225, %224 : vector<8x32xf32>
    %230 = arith.addf %228, %229 : vector<8x32xf32>
    %231 = math.tanh %230 : vector<8x32xf32>
    %232 = arith.mulf %227, %231 : vector<8x32xf32>
    %c0_97 = arith.constant 0 : index
    %c0_98 = arith.constant 0 : index
    %c0_99 = arith.constant 0 : index
    %233 = vector.load %arg6[%c0_97, %c0_98, %c0_99] : memref<8x8x32xf32, #tpu.memory_space<vmem>>, vector<1x8x32xf32>
    %234 = vector.shape_cast %233 : vector<1x8x32xf32> to vector<8x32xf32>
    %235 = vector.shape_cast %232 : vector<8x32xf32> to vector<1x8x32xf32>
    tpu.vector_store %arg6[%c0_97, %c0_98, %c0_99], %235 {strides = array<i32>} : memref<8x8x32xf32, #tpu.memory_space<vmem>>, vector<1x8x32xf32>,
    %c1_100 = arith.constant 1 : index
    %c0_101 = arith.constant 0 : index
    %c0_102 = arith.constant 0 : index
    %236 = vector.load %arg9[%c1_100, %c0_101, %c0_102] : memref<8x8x128xf32, #tpu.memory_space<vmem>>, vector<1x8x128xf32>
    %237 = vector.shape_cast %236 : vector<1x8x128xf32> to vector<8x128xf32>
    %cst_103 = arith.constant dense<0.000000e+00> : vector<8x128xf32>
    %238 = tpu.matmul %232, %197, %cst_103 {dimension_numbers = #tpu.dot_dimension_numbers<[1], [0], [0], [1], [0, 0, 1, 1], [], []>} : vector<8x32xf32>, vector<32x128xf32>, vector<8x128xf32> -> vector<8x128xf32>
    %239 = arith.addf %237, %238 : vector<8x128xf32>
    %240 = vector.extract_strided_slice %239 {offsets = [0, 0], sizes = [8, 96], strides = [1, 1]} : vector<8x128xf32> to vector<8x96xf32>
    %241 = arith.negf %240 : vector<8x96xf32>
    %242 = math.exp %241 : vector<8x96xf32>
    %cst_104 = arith.constant 1.000000e+00 : f32
    %243 = vector.broadcast %cst_104 : f32 to vector<8x96xf32>
    %244 = arith.addf %243, %242 : vector<8x96xf32>
    %245 = arith.divf %243, %244 : vector<8x96xf32>
    %246 = vector.extract_strided_slice %239 {offsets = [0, 96], sizes = [8, 32], strides = [1, 1]} : vector<8x128xf32> to vector<8x32xf32>
    %247 = math.tanh %246 : vector<8x32xf32>
    %248 = vector.extract_strided_slice %245 {offsets = [0, 0], sizes = [8, 32], strides = [1, 1]} : vector<8x96xf32> to vector<8x32xf32>
    %249 = vector.extract_strided_slice %245 {offsets = [0, 32], sizes = [8, 32], strides = [1, 1]} : vector<8x96xf32> to vector<8x32xf32>
    %250 = vector.extract_strided_slice %245 {offsets = [0, 64], sizes = [8, 32], strides = [1, 1]} : vector<8x96xf32> to vector<8x32xf32>
    %251 = arith.mulf %249, %230 : vector<8x32xf32>
    %252 = arith.mulf %248, %247 : vector<8x32xf32>
    %253 = arith.addf %251, %252 : vector<8x32xf32>
    %254 = math.tanh %253 : vector<8x32xf32>
    %255 = arith.mulf %250, %254 : vector<8x32xf32>
    %c1_105 = arith.constant 1 : index
    %c0_106 = arith.constant 0 : index
    %c0_107 = arith.constant 0 : index
    %256 = vector.load %arg6[%c1_105, %c0_106, %c0_107] : memref<8x8x32xf32, #tpu.memory_space<vmem>>, vector<1x8x32xf32>
    %257 = vector.shape_cast %256 : vector<1x8x32xf32> to vector<8x32xf32>
    %258 = vector.shape_cast %255 : vector<8x32xf32> to vector<1x8x32xf32>
    tpu.vector_store %arg6[%c1_105, %c0_106, %c0_107], %258 {strides = array<i32>} : memref<8x8x32xf32, #tpu.memory_space<vmem>>, vector<1x8x32xf32>,
    %c2_108 = arith.constant 2 : index
    %c0_109 = arith.constant 0 : index
    %c0_110 = arith.constant 0 : index
    %259 = vector.load %arg9[%c2_108, %c0_109, %c0_110] : memref<8x8x128xf32, #tpu.memory_space<vmem>>, vector<1x8x128xf32>
    %260 = vector.shape_cast %259 : vector<1x8x128xf32> to vector<8x128xf32>
    %cst_111 = arith.constant dense<0.000000e+00> : vector<8x128xf32>
    %261 = tpu.matmul %255, %197, %cst_111 {dimension_numbers = #tpu.dot_dimension_numbers<[1], [0], [0], [1], [0, 0, 1, 1], [], []>} : vector<8x32xf32>, vector<32x128xf32>, vector<8x128xf32> -> vector<8x128xf32>
    %262 = arith.addf %260, %261 : vector<8x128xf32>
    %263 = vector.extract_strided_slice %262 {offsets = [0, 0], sizes = [8, 96], strides = [1, 1]} : vector<8x128xf32> to vector<8x96xf32>
    %264 = arith.negf %263 : vector<8x96xf32>
    %265 = math.exp %264 : vector<8x96xf32>
    %cst_112 = arith.constant 1.000000e+00 : f32
    %266 = vector.broadcast %cst_112 : f32 to vector<8x96xf32>
    %267 = arith.addf %266, %265 : vector<8x96xf32>
    %268 = arith.divf %266, %267 : vector<8x96xf32>
    %269 = vector.extract_strided_slice %262 {offsets = [0, 96], sizes = [8, 32], strides = [1, 1]} : vector<8x128xf32> to vector<8x32xf32>
    %270 = math.tanh %269 : vector<8x32xf32>
    %271 = vector.extract_strided_slice %268 {offsets = [0, 0], sizes = [8, 32], strides = [1, 1]} : vector<8x96xf32> to vector<8x32xf32>
    %272 = vector.extract_strided_slice %268 {offsets = [0, 32], sizes = [8, 32], strides = [1, 1]} : vector<8x96xf32> to vector<8x32xf32>
    %273 = vector.extract_strided_slice %268 {offsets = [0, 64], sizes = [8, 32], strides = [1, 1]} : vector<8x96xf32> to vector<8x32xf32>
    %274 = arith.mulf %272, %253 : vector<8x32xf32>
    %275 = arith.mulf %271, %270 : vector<8x32xf32>
    %276 = arith.addf %274, %275 : vector<8x32xf32>
    %277 = math.tanh %276 : vector<8x32xf32>
    %278 = arith.mulf %273, %277 : vector<8x32xf32>
    %c2_113 = arith.constant 2 : index
    %c0_114 = arith.constant 0 : index
    %c0_115 = arith.constant 0 : index
    %279 = vector.load %arg6[%c2_113, %c0_114, %c0_115] : memref<8x8x32xf32, #tpu.memory_space<vmem>>, vector<1x8x32xf32>
    %280 = vector.shape_cast %279 : vector<1x8x32xf32> to vector<8x32xf32>
    %281 = vector.shape_cast %278 : vector<8x32xf32> to vector<1x8x32xf32>
    tpu.vector_store %arg6[%c2_113, %c0_114, %c0_115], %281 {strides = array<i32>} : memref<8x8x32xf32, #tpu.memory_space<vmem>>, vector<1x8x32xf32>,
    %c3_116 = arith.constant 3 : index
    %c0_117 = arith.constant 0 : index
    %c0_118 = arith.constant 0 : index
    %282 = vector.load %arg9[%c3_116, %c0_117, %c0_118] : memref<8x8x128xf32, #tpu.memory_space<vmem>>, vector<1x8x128xf32>
    %283 = vector.shape_cast %282 : vector<1x8x128xf32> to vector<8x128xf32>
    %cst_119 = arith.constant dense<0.000000e+00> : vector<8x128xf32>
    %284 = tpu.matmul %278, %197, %cst_119 {dimension_numbers = #tpu.dot_dimension_numbers<[1], [0], [0], [1], [0, 0, 1, 1], [], []>} : vector<8x32xf32>, vector<32x128xf32>, vector<8x128xf32> -> vector<8x128xf32>
    %285 = arith.addf %283, %284 : vector<8x128xf32>
    %286 = vector.extract_strided_slice %285 {offsets = [0, 0], sizes = [8, 96], strides = [1, 1]} : vector<8x128xf32> to vector<8x96xf32>
    %287 = arith.negf %286 : vector<8x96xf32>
    %288 = math.exp %287 : vector<8x96xf32>
    %cst_120 = arith.constant 1.000000e+00 : f32
    %289 = vector.broadcast %cst_120 : f32 to vector<8x96xf32>
    %290 = arith.addf %289, %288 : vector<8x96xf32>
    %291 = arith.divf %289, %290 : vector<8x96xf32>
    %292 = vector.extract_strided_slice %285 {offsets = [0, 96], sizes = [8, 32], strides = [1, 1]} : vector<8x128xf32> to vector<8x32xf32>
    %293 = math.tanh %292 : vector<8x32xf32>
    %294 = vector.extract_strided_slice %291 {offsets = [0, 0], sizes = [8, 32], strides = [1, 1]} : vector<8x96xf32> to vector<8x32xf32>
    %295 = vector.extract_strided_slice %291 {offsets = [0, 32], sizes = [8, 32], strides = [1, 1]} : vector<8x96xf32> to vector<8x32xf32>
    %296 = vector.extract_strided_slice %291 {offsets = [0, 64], sizes = [8, 32], strides = [1, 1]} : vector<8x96xf32> to vector<8x32xf32>
    %297 = arith.mulf %295, %276 : vector<8x32xf32>
    %298 = arith.mulf %294, %293 : vector<8x32xf32>
    %299 = arith.addf %297, %298 : vector<8x32xf32>
    %300 = math.tanh %299 : vector<8x32xf32>
    %301 = arith.mulf %296, %300 : vector<8x32xf32>
    %c3_121 = arith.constant 3 : index
    %c0_122 = arith.constant 0 : index
    %c0_123 = arith.constant 0 : index
    %302 = vector.load %arg6[%c3_121, %c0_122, %c0_123] : memref<8x8x32xf32, #tpu.memory_space<vmem>>, vector<1x8x32xf32>
    %303 = vector.shape_cast %302 : vector<1x8x32xf32> to vector<8x32xf32>
    %304 = vector.shape_cast %301 : vector<8x32xf32> to vector<1x8x32xf32>
    tpu.vector_store %arg6[%c3_121, %c0_122, %c0_123], %304 {strides = array<i32>} : memref<8x8x32xf32, #tpu.memory_space<vmem>>, vector<1x8x32xf32>,
    %c4_124 = arith.constant 4 : index
    %c0_125 = arith.constant 0 : index
    %c0_126 = arith.constant 0 : index
    %305 = vector.load %arg9[%c4_124, %c0_125, %c0_126] : memref<8x8x128xf32, #tpu.memory_space<vmem>>, vector<1x8x128xf32>
    %306 = vector.shape_cast %305 : vector<1x8x128xf32> to vector<8x128xf32>
    %cst_127 = arith.constant dense<0.000000e+00> : vector<8x128xf32>
    %307 = tpu.matmul %301, %197, %cst_127 {dimension_numbers = #tpu.dot_dimension_numbers<[1], [0], [0], [1], [0, 0, 1, 1], [], []>} : vector<8x32xf32>, vector<32x128xf32>, vector<8x128xf32> -> vector<8x128xf32>
    %308 = arith.addf %306, %307 : vector<8x128xf32>
    %309 = vector.extract_strided_slice %308 {offsets = [0, 0], sizes = [8, 96], strides = [1, 1]} : vector<8x128xf32> to vector<8x96xf32>
    %310 = arith.negf %309 : vector<8x96xf32>
    %311 = math.exp %310 : vector<8x96xf32>
    %cst_128 = arith.constant 1.000000e+00 : f32
    %312 = vector.broadcast %cst_128 : f32 to vector<8x96xf32>
    %313 = arith.addf %312, %311 : vector<8x96xf32>
    %314 = arith.divf %312, %313 : vector<8x96xf32>
    %315 = vector.extract_strided_slice %308 {offsets = [0, 96], sizes = [8, 32], strides = [1, 1]} : vector<8x128xf32> to vector<8x32xf32>
    %316 = math.tanh %315 : vector<8x32xf32>
    %317 = vector.extract_strided_slice %314 {offsets = [0, 0], sizes = [8, 32], strides = [1, 1]} : vector<8x96xf32> to vector<8x32xf32>
    %318 = vector.extract_strided_slice %314 {offsets = [0, 32], sizes = [8, 32], strides = [1, 1]} : vector<8x96xf32> to vector<8x32xf32>
    %319 = vector.extract_strided_slice %314 {offsets = [0, 64], sizes = [8, 32], strides = [1, 1]} : vector<8x96xf32> to vector<8x32xf32>
    %320 = arith.mulf %318, %299 : vector<8x32xf32>
    %321 = arith.mulf %317, %316 : vector<8x32xf32>
    %322 = arith.addf %320, %321 : vector<8x32xf32>
    %323 = math.tanh %322 : vector<8x32xf32>
    %324 = arith.mulf %319, %323 : vector<8x32xf32>
    %c4_129 = arith.constant 4 : index
    %c0_130 = arith.constant 0 : index
    %c0_131 = arith.constant 0 : index
    %325 = vector.load %arg6[%c4_129, %c0_130, %c0_131] : memref<8x8x32xf32, #tpu.memory_space<vmem>>, vector<1x8x32xf32>
    %326 = vector.shape_cast %325 : vector<1x8x32xf32> to vector<8x32xf32>
    %327 = vector.shape_cast %324 : vector<8x32xf32> to vector<1x8x32xf32>
    tpu.vector_store %arg6[%c4_129, %c0_130, %c0_131], %327 {strides = array<i32>} : memref<8x8x32xf32, #tpu.memory_space<vmem>>, vector<1x8x32xf32>,
    %c5_132 = arith.constant 5 : index
    %c0_133 = arith.constant 0 : index
    %c0_134 = arith.constant 0 : index
    %328 = vector.load %arg9[%c5_132, %c0_133, %c0_134] : memref<8x8x128xf32, #tpu.memory_space<vmem>>, vector<1x8x128xf32>
    %329 = vector.shape_cast %328 : vector<1x8x128xf32> to vector<8x128xf32>
    %cst_135 = arith.constant dense<0.000000e+00> : vector<8x128xf32>
    %330 = tpu.matmul %324, %197, %cst_135 {dimension_numbers = #tpu.dot_dimension_numbers<[1], [0], [0], [1], [0, 0, 1, 1], [], []>} : vector<8x32xf32>, vector<32x128xf32>, vector<8x128xf32> -> vector<8x128xf32>
    %331 = arith.addf %329, %330 : vector<8x128xf32>
    %332 = vector.extract_strided_slice %331 {offsets = [0, 0], sizes = [8, 96], strides = [1, 1]} : vector<8x128xf32> to vector<8x96xf32>
    %333 = arith.negf %332 : vector<8x96xf32>
    %334 = math.exp %333 : vector<8x96xf32>
    %cst_136 = arith.constant 1.000000e+00 : f32
    %335 = vector.broadcast %cst_136 : f32 to vector<8x96xf32>
    %336 = arith.addf %335, %334 : vector<8x96xf32>
    %337 = arith.divf %335, %336 : vector<8x96xf32>
    %338 = vector.extract_strided_slice %331 {offsets = [0, 96], sizes = [8, 32], strides = [1, 1]} : vector<8x128xf32> to vector<8x32xf32>
    %339 = math.tanh %338 : vector<8x32xf32>
    %340 = vector.extract_strided_slice %337 {offsets = [0, 0], sizes = [8, 32], strides = [1, 1]} : vector<8x96xf32> to vector<8x32xf32>
    %341 = vector.extract_strided_slice %337 {offsets = [0, 32], sizes = [8, 32], strides = [1, 1]} : vector<8x96xf32> to vector<8x32xf32>
    %342 = vector.extract_strided_slice %337 {offsets = [0, 64], sizes = [8, 32], strides = [1, 1]} : vector<8x96xf32> to vector<8x32xf32>
    %343 = arith.mulf %341, %322 : vector<8x32xf32>
    %344 = arith.mulf %340, %339 : vector<8x32xf32>
    %345 = arith.addf %343, %344 : vector<8x32xf32>
    %346 = math.tanh %345 : vector<8x32xf32>
    %347 = arith.mulf %342, %346 : vector<8x32xf32>
    %c5_137 = arith.constant 5 : index
    %c0_138 = arith.constant 0 : index
    %c0_139 = arith.constant 0 : index
    %348 = vector.load %arg6[%c5_137, %c0_138, %c0_139] : memref<8x8x32xf32, #tpu.memory_space<vmem>>, vector<1x8x32xf32>
    %349 = vector.shape_cast %348 : vector<1x8x32xf32> to vector<8x32xf32>
    %350 = vector.shape_cast %347 : vector<8x32xf32> to vector<1x8x32xf32>
    tpu.vector_store %arg6[%c5_137, %c0_138, %c0_139], %350 {strides = array<i32>} : memref<8x8x32xf32, #tpu.memory_space<vmem>>, vector<1x8x32xf32>,
    %c6_140 = arith.constant 6 : index
    %c0_141 = arith.constant 0 : index
    %c0_142 = arith.constant 0 : index
    %351 = vector.load %arg9[%c6_140, %c0_141, %c0_142] : memref<8x8x128xf32, #tpu.memory_space<vmem>>, vector<1x8x128xf32>
    %352 = vector.shape_cast %351 : vector<1x8x128xf32> to vector<8x128xf32>
    %cst_143 = arith.constant dense<0.000000e+00> : vector<8x128xf32>
    %353 = tpu.matmul %347, %197, %cst_143 {dimension_numbers = #tpu.dot_dimension_numbers<[1], [0], [0], [1], [0, 0, 1, 1], [], []>} : vector<8x32xf32>, vector<32x128xf32>, vector<8x128xf32> -> vector<8x128xf32>
    %354 = arith.addf %352, %353 : vector<8x128xf32>
    %355 = vector.extract_strided_slice %354 {offsets = [0, 0], sizes = [8, 96], strides = [1, 1]} : vector<8x128xf32> to vector<8x96xf32>
    %356 = arith.negf %355 : vector<8x96xf32>
    %357 = math.exp %356 : vector<8x96xf32>
    %cst_144 = arith.constant 1.000000e+00 : f32
    %358 = vector.broadcast %cst_144 : f32 to vector<8x96xf32>
    %359 = arith.addf %358, %357 : vector<8x96xf32>
    %360 = arith.divf %358, %359 : vector<8x96xf32>
    %361 = vector.extract_strided_slice %354 {offsets = [0, 96], sizes = [8, 32], strides = [1, 1]} : vector<8x128xf32> to vector<8x32xf32>
    %362 = math.tanh %361 : vector<8x32xf32>
    %363 = vector.extract_strided_slice %360 {offsets = [0, 0], sizes = [8, 32], strides = [1, 1]} : vector<8x96xf32> to vector<8x32xf32>
    %364 = vector.extract_strided_slice %360 {offsets = [0, 32], sizes = [8, 32], strides = [1, 1]} : vector<8x96xf32> to vector<8x32xf32>
    %365 = vector.extract_strided_slice %360 {offsets = [0, 64], sizes = [8, 32], strides = [1, 1]} : vector<8x96xf32> to vector<8x32xf32>
    %366 = arith.mulf %364, %345 : vector<8x32xf32>
    %367 = arith.mulf %363, %362 : vector<8x32xf32>
    %368 = arith.addf %366, %367 : vector<8x32xf32>
    %369 = math.tanh %368 : vector<8x32xf32>
    %370 = arith.mulf %365, %369 : vector<8x32xf32>
    %c6_145 = arith.constant 6 : index
    %c0_146 = arith.constant 0 : index
    %c0_147 = arith.constant 0 : index
    %371 = vector.load %arg6[%c6_145, %c0_146, %c0_147] : memref<8x8x32xf32, #tpu.memory_space<vmem>>, vector<1x8x32xf32>
    %372 = vector.shape_cast %371 : vector<1x8x32xf32> to vector<8x32xf32>
    %373 = vector.shape_cast %370 : vector<8x32xf32> to vector<1x8x32xf32>
    tpu.vector_store %arg6[%c6_145, %c0_146, %c0_147], %373 {strides = array<i32>} : memref<8x8x32xf32, #tpu.memory_space<vmem>>, vector<1x8x32xf32>,
    %c7_148 = arith.constant 7 : index
    %c0_149 = arith.constant 0 : index
    %c0_150 = arith.constant 0 : index
    %374 = vector.load %arg9[%c7_148, %c0_149, %c0_150] : memref<8x8x128xf32, #tpu.memory_space<vmem>>, vector<1x8x128xf32>
    %375 = vector.shape_cast %374 : vector<1x8x128xf32> to vector<8x128xf32>
    %cst_151 = arith.constant dense<0.000000e+00> : vector<8x128xf32>
    %376 = tpu.matmul %370, %197, %cst_151 {dimension_numbers = #tpu.dot_dimension_numbers<[1], [0], [0], [1], [0, 0, 1, 1], [], []>} : vector<8x32xf32>, vector<32x128xf32>, vector<8x128xf32> -> vector<8x128xf32>
    %377 = arith.addf %375, %376 : vector<8x128xf32>
    %378 = vector.extract_strided_slice %377 {offsets = [0, 0], sizes = [8, 96], strides = [1, 1]} : vector<8x128xf32> to vector<8x96xf32>
    %379 = arith.negf %378 : vector<8x96xf32>
    %380 = math.exp %379 : vector<8x96xf32>
    %cst_152 = arith.constant 1.000000e+00 : f32
    %381 = vector.broadcast %cst_152 : f32 to vector<8x96xf32>
    %382 = arith.addf %381, %380 : vector<8x96xf32>
    %383 = arith.divf %381, %382 : vector<8x96xf32>
    %384 = vector.extract_strided_slice %377 {offsets = [0, 96], sizes = [8, 32], strides = [1, 1]} : vector<8x128xf32> to vector<8x32xf32>
    %385 = math.tanh %384 : vector<8x32xf32>
    %386 = vector.extract_strided_slice %383 {offsets = [0, 0], sizes = [8, 32], strides = [1, 1]} : vector<8x96xf32> to vector<8x32xf32>
    %387 = vector.extract_strided_slice %383 {offsets = [0, 32], sizes = [8, 32], strides = [1, 1]} : vector<8x96xf32> to vector<8x32xf32>
    %388 = vector.extract_strided_slice %383 {offsets = [0, 64], sizes = [8, 32], strides = [1, 1]} : vector<8x96xf32> to vector<8x32xf32>
    %389 = arith.mulf %387, %368 : vector<8x32xf32>
    %390 = arith.mulf %386, %385 : vector<8x32xf32>
    %391 = arith.addf %389, %390 : vector<8x32xf32>
    %392 = math.tanh %391 : vector<8x32xf32>
    %393 = arith.mulf %388, %392 : vector<8x32xf32>
    %c7_153 = arith.constant 7 : index
    %c0_154 = arith.constant 0 : index
    %c0_155 = arith.constant 0 : index
    %394 = vector.load %arg6[%c7_153, %c0_154, %c0_155] : memref<8x8x32xf32, #tpu.memory_space<vmem>>, vector<1x8x32xf32>
    %395 = vector.shape_cast %394 : vector<1x8x32xf32> to vector<8x32xf32>
    %396 = vector.shape_cast %393 : vector<8x32xf32> to vector<1x8x32xf32>
    tpu.vector_store %arg6[%c7_153, %c0_154, %c0_155], %396 {strides = array<i32>} : memref<8x8x32xf32, #tpu.memory_space<vmem>>, vector<1x8x32xf32>,
    %c1_156 = arith.constant 1 : index
    %c0_157 = arith.constant 0 : index
    %c0_158 = arith.constant 0 : index
    %397 = vector.load %arg7[%c1_156, %c0_157, %c0_158] : memref<2x8x32xf32, #tpu.memory_space<vmem>>, vector<1x8x32xf32>
    %398 = vector.shape_cast %397 : vector<1x8x32xf32> to vector<8x32xf32>
    %399 = vector.shape_cast %393 : vector<8x32xf32> to vector<1x8x32xf32>
    tpu.vector_store %arg7[%c1_156, %c0_157, %c0_158], %399 {strides = array<i32>} : memref<2x8x32xf32, #tpu.memory_space<vmem>>, vector<1x8x32xf32>,
    %c1_159 = arith.constant 1 : index
    %c0_160 = arith.constant 0 : index
    %c0_161 = arith.constant 0 : index
    %400 = vector.load %arg8[%c1_159, %c0_160, %c0_161] : memref<2x8x32xf32, #tpu.memory_space<vmem>>, vector<1x8x32xf32>
    %401 = vector.shape_cast %400 : vector<1x8x32xf32> to vector<8x32xf32>
    %402 = vector.shape_cast %391 : vector<8x32xf32> to vector<1x8x32xf32>
    tpu.vector_store %arg8[%c1_159, %c0_160, %c0_161], %402 {strides = array<i32>} : memref<2x8x32xf32, #tpu.memory_space<vmem>>, vector<1x8x32xf32>,
    return
  }
}

</mosaic_0001>

<bundles_post_ra>
// kernel: tpu_custom_call.1
= control target key start
LH: loop header
LB: loop body
LE: loop exit
PB: predicated region body
PF: predicated region fallthrough
CT: control target
= control target key end

     0   :  { %14 = vsyncpa [#allocation4], 0  ;;  %s2097_s0 = inlined_call_operand.hbm [shape: f32[8,8,128], index: 0, kind: input, shape index: {}]   ;;  %s2098_s1 = inlined_call_operand.hbm [shape: f32[2,8,32], index: 1, kind: input, shape index: {}]   ;;  %s2099_s2 = inlined_call_operand.hbm [shape: f32[2,8,32], index: 2, kind: input, shape index: {}]   ;;  %s2100_s3 = inlined_call_operand.hbm [shape: f32[1,32,128], index: 3, kind: input, shape index: {}]   ;;  %s2101_s4 = inlined_call_operand.hbm [shape: f32[2,32,128], index: 4, kind: input, shape index: {}]   ;;  %s2102_s5 = inlined_call_operand.vmem [shape: f32[1,1,128], index: 5, kind: input, shape index: {}]   ;;  %s2103_s6 = inlined_call_operand.hbm [shape: f32[8,8,32], index: 6, kind: output, shape index: {0}]   ;;  %s2104_s7 = inlined_call_operand.hbm [shape: f32[2,8,32], index: 7, kind: output, shape index: {1}]   ;;  %s2105_s8 = inlined_call_operand.hbm [shape: f32[2,8,32], index: 8, kind: output, shape index: {2}]  }
   0x1   :  { %15 = vsyncpa [#allocation7], 0 }
   0x2   :  { %16 = vsyncpa [#allocation10], 0 }
   0x3   :  { %17 = vsyncpa [#allocation5], 0 }
   0x4   :  { %18 = vsyncpa [#allocation14], 0  ;;  %s36_s29 = sshll.u32 %s2098_s1, 4  ;;  %s1756_s30 = smov [#allocation6]   ;;  %s37_s29 = int_to_ptr.hbm [resolvable:$true] %s36_s29 }
   0x5   :  { %s38_s9 = sshll.u32 %s1756_s30, 4  ;;  %s62_s12 = sshll.u32 %s2100_s3, 4  ;;  %s39_s9 = int_to_ptr.vmem [resolvable:$true] %s38_s9  ;;  %s63_s12 = int_to_ptr.hbm [resolvable:$true] %s62_s12 }
   0x6   :  { %s1757_s13 = smov 128   ;;  %s1758_s14 = smov 8  }
   0x7   :  { %44 = dma.hbm_to_vmem [thread:$0]  %s37_s29, 256, %s39_s9, [#allocation7], %s1757_s13, %s1757_s13, %s1758_s14  }
   0x8   :  { %s1759_s15 = smov [#allocation9]   ;;  %s23_s1 = sshll.u32 %s2097_s0, 4  ;;  %s24_s1 = int_to_ptr.hbm [resolvable:$true] %s23_s1 }
   0x9   :  { %s64_s16 = sshll.u32 %s1759_s15, 4  ;;  %s49_s20 = sshll.u32 %s2099_s2, 4  ;;  %s65_s16 = int_to_ptr.vmem [resolvable:$true] %s64_s16  ;;  %s50_s20 = int_to_ptr.hbm [resolvable:$true] %s49_s20 }
   0xa   :  { %70 = dma.hbm_to_vmem [thread:$0]  %s63_s12, 512, %s65_s16, [#allocation10], %s1757_s13, %s1757_s13, %s1758_s14  }
   0xb   :  { %s1760_s21 = smov [#allocation3]   ;;  %s1761_s23 = smov [#allocation8]  }
   0xc   :  { %s25_s22 = sshll.u32 %s1760_s21, 4  ;;  %s51_s0 = sshll.u32 %s1761_s23, 4  ;;  %s26_s22 = int_to_ptr.vmem [resolvable:$true] %s25_s22  ;;  %s52_s0 = int_to_ptr.vmem [resolvable:$true] %s51_s0 }
   0xd   :  { %31 = dma.hbm_to_vmem [thread:$0]  %s24_s1, 1024, %s26_s22, [#allocation4], %s1757_s13, %s1757_s13, %s1758_s14  }
   0xe   :  { %s75_s26 = sshll.u32 %s2101_s4, 4  ;;  %s1762_s2 = smov [#allocation11]   ;;  %s76_s26 = int_to_ptr.hbm [resolvable:$true] %s75_s26 }
   0xf   :  { %57 = dma.hbm_to_vmem [thread:$0]  %s50_s20, 256, %s52_s0, [#allocation7], %s1757_s13, %s1757_s13, %s1758_s14  }
  0x10   :  { %s77_s27 = sshll.u32 %s1762_s2, 4  ;;  %s78_s27 = int_to_ptr.vmem [resolvable:$true] %s77_s27 }
  0x11   :  { %83 = dma.hbm_to_vmem [thread:$0]  %s76_s26, 1024, %s78_s27, [#allocation10], %s1757_s13, %s1757_s13, %s1758_s14  }
  0x12   :  { %1746 = dma.done.wait [#allocation4], 1024  }
  0x13   :  { %1747 = vsyncadd [#allocation4], 4294966272 }
  0x14   :  { %1748 = dma.done.wait [#allocation7], 512  }
  0x15   :  { %1749 = vsyncadd [#allocation7], 4294966784 }
  0x16   :  { %1750 = dma.done.wait [#allocation10], 1536  }
  0x17   :  { %1751 = vsyncadd [#allocation10], 4294965760  ;;  %v1844_v0 = vld [vmem:[#allocation11 + $0x18] sm:$0xff]  ;;  %v1846_v1 = vld [vmem:[#allocation11 + $0x10] sm:$0xff]  ;;  %vm113_vm0 = vcmask 261120   ;;  %s1763_s4 = smov 32  }
  0x18   :  { %129 = vmatpush.msra.mxu0 %v1844_v0  ;;  %200 = vmatpush.msra.mxu1 %v1844_v0  ;;  %v1850_v2 = vld [vmem:[#allocation11 + $0x8] sm:$0xff]  ;;  %v1855_v3 = vld [vmem:[#allocation11] sm:$0xff]  ;;  %v111_v9 = vld [vmem:[#allocation8] sm:$0xff]  ;;  %s1764_s28 = smov 64   ;;  %s1766_s9 = smov [#allocation12]  }
  0x19   :  { %268 = vmatpush.msra.mxu2 %v1844_v0  ;;  %v110_v4 = vld [vmem:[#allocation6] sm:$0xff]  ;;  %v185_v33 = vld [vmem:[#allocation3 + $0x8] sm:$0xff]  ;;  %v253_v59 = vld [vmem:[#allocation3 + $0x10] sm:$0xff]  ;;  %s1316_s10 = sshll.u32 %s1766_s9, 4  ;;  %s1318_s15 = sshll.u32 %s2103_s6, 4  ;;  %s1317_s10 = int_to_ptr.vmem [resolvable:$true] %s1316_s10  ;;  %s1319_s15 = int_to_ptr.hbm [resolvable:$true] %s1318_s15 }
  0x1a   :  { %130 = vmatpush.msra.mxu0 %v1846_v1  ;;  %201 = vmatpush.msra.mxu1 %v1846_v1  ;;  %v112_v5 = vld [vmem:[#allocation3] sm:$0xff]  ;;  %s1767_s16 = smov [#allocation13]   ;;  %s1331_s3 = sshll.u32 %s2104_s7, 4  ;;  %s1332_s3 = int_to_ptr.hbm [resolvable:$true] %s1331_s3 }
  0x1b   :  { %269 = vmatpush.msra.mxu2 %v1846_v1  ;;  %s1329_s17 = sshll.u32 %s1767_s16, 4  ;;  %s1768_s19 = smov [#allocation15]   ;;  %s1330_s17 = int_to_ptr.vmem [resolvable:$true] %s1329_s17 }
  0x1c   :  { %131 = vmatpush.msra.mxu0 %v1850_v2  ;;  %202 = vmatpush.msra.mxu1 %v1850_v2  ;;  %s1342_s20 = sshll.u32 %s1768_s19, 4  ;;  %s1344_s23 = sshll.u32 %s2105_s8, 4  ;;  %s1343_s20 = int_to_ptr.vmem [resolvable:$true] %s1342_s20  ;;  %s1345_s23 = int_to_ptr.hbm [resolvable:$true] %s1344_s23 }
  0x1d   :  { %270 = vmatpush.msra.mxu2 %v1850_v2 }
  0x1e   :  { %132 = vmatpush.msra.mxu0 %v1855_v3  ;;  %203 = vmatpush.msra.mxu1 %v1855_v3 }
  0x1f   :  { %1368 = vmatmul.msk.f32.vlgmr.msra.gmra.mxu0 %vm113_vm0, %v110_v4  ;;  %271 = vmatpush.msra.mxu2 %v1855_v3 }
  0x20   :  { %336 = vmatpush.msrb.mxu1 %v1844_v0  ;;  %404 = vmatpush.msrb.mxu0 %v1844_v0 }
  0x21   :  { %540 = vmatpush.msrb.mxu2 %v1844_v0 }
  0x22   :  { %337 = vmatpush.msrb.mxu1 %v1846_v1  ;;  %405 = vmatpush.msrb.mxu0 %v1846_v1 }
  0x23   :  { %541 = vmatpush.msrb.mxu2 %v1846_v1 }
  0x24   :  { %338 = vmatpush.msrb.mxu1 %v1850_v2  ;;  %406 = vmatpush.msrb.mxu0 %v1850_v2 }
  0x25   :  { %542 = vmatpush.msrb.mxu2 %v1850_v2 }
  0x26   :  { %339 = vmatpush.msrb.mxu1 %v1855_v3  ;;  %407 = vmatpush.msrb.mxu0 %v1855_v3 }
  0x27   :  { %543 = vmatpush.msrb.mxu2 %v1855_v3 }
  0x9c   :  { %v134_v6 = vpop.f32.mrf.mxu0 }
  0x9d   :  { %v137_v7 = vadd.f32 %v134_v6, %v112_v5 }
  0x9f   :  { %1426 = vtanh.f32 %v137_v7  ;;  %v1369_v10 = vmul.f32 -1.442695, %v137_v7 }
  0xa1   :  { %1428 = vpow2.f32 %v1369_v10 }
  0xa5   :  { %v1427_v8 = vpop.eup %1426 }
  0xa6   :  { %164 = vrot.lane.b32.xlu0 %v1427_v8, %s1763_s4 }
  0xa7   :  { %v1429_v11 = vpop.eup %1428 }
  0xa8   :  { %v141_v12 = vadd.f32 1.0, %v1429_v11 }
  0xaa   :  { %1430 = vrcp.f32 %v141_v12  ;;  %v153_v18 = vand.u32 2147483648, %v141_v12  ;;  %vm147_vm2 = vweird.f32 %v141_v12  ;;  %v151_v19 = vand.u32 2147483647, %v141_v12 }
  0xac   :  { %v154_v21 = vor.u32 1.1754944e-38, %v153_v18  ;;  %vm152_vm4 = vcmp.eq.f32.partialorder %v151_v19, 8.507059e+37 }
  0xae   :  { %159 = vrot.lane.b32.xlu0 %v111_v9, %s1763_s4 }
  0xb0   :  { %v1431_v13 = vpop.eup %1430 }
  0xb1   :  { %v143_v14 = vmul.f32 %v1431_v13, %v141_v12  ;;  %vm148_vm1 = vweird.f32 %v1431_v13 }
  0xb2   :  { %vm149_vm3 = vmor %vm147_vm2, %vm148_vm1 }
  0xb3   :  { %v144_v15 = vsub.f32 1.0, %v143_v14 }
  0xb5   :  { %v145_v16 = vmul.f32 %v1431_v13, %v144_v15 }
  0xb7   :  { %v146_v17 = vadd.f32 %v1431_v13, %v145_v16 }
  0xb9   :  { %v150_v20 = vsel %vm149_vm3, %v1431_v13, %v146_v17 }
  0xba   :  { %v155_v23 = vsel %vm152_vm4, %v154_v21, %v150_v20  ;;  %v321_v21 = vld [vmem:[#allocation3 + $0x18] sm:$0xff] }
 0x118   :  { %v165_v22 = vpop.permute.xlu0 %164 }
 0x119   :  { %v167_v24 = vmul.f32 %v165_v22, %v155_v23 }
 0x11b   :  { %169 = vrot.lane.b32.xlu1 %v167_v24, %s1763_s4 }
 0x120   :  { %v160_v25 = vpop.permute.xlu0 %159 }
 0x121   :  { %v162_v26 = vmul.f32 %v160_v25, %v155_v23 }
 0x18d   :  { %v170_v27 = vpop.permute.xlu1 %169 }
 0x18e   :  { %v172_v28 = vadd.f32 %v170_v27, %v162_v26 }
 0x190   :  { %1432 = vtanh.f32 %v172_v28 }
 0x196   :  { %v1433_v29 = vpop.eup %1432 }
 0x197   :  { %175 = vrot.lane.b32.xlu1 %v1433_v29, %s1763_s4 }
 0x209   :  { %v176_v30 = vpop.permute.xlu1 %175 }
 0x20a   :  { %v178_v31 = vmul.f32 %v176_v30, %v155_v23 }
 0x20c   :  { %180 = vrot.lane.b32.xlu2 %v178_v31, %s1764_s28 }
 0x266   :  { %v181_v32 = vpop.permute.xlu2 %180 }
 0x267   :  { %183 = vst.msk [vmem:[#allocation12] sm:$0xff] %vm113_vm0, %v181_v32  ;;  %1370 = vmatmul.msk.f32.vlgmr.msra.gmra.mxu1 %vm113_vm0, %v181_v32 }
 0x268   :  { %472 = vmatpush.msra.mxu1 %v1844_v0 }
 0x26a   :  { %473 = vmatpush.msra.mxu1 %v1846_v1 }
 0x26c   :  { %474 = vmatpush.msra.mxu1 %v1850_v2 }
 0x26e   :  { %475 = vmatpush.msra.mxu1 %v1855_v3 }
 0x2e4   :  { %v205_v34 = vpop.f32.mrf.mxu1 }
 0x2e5   :  { %v208_v35 = vadd.f32 %v205_v34, %v185_v33 }
 0x2e7   :  { %1434 = vtanh.f32 %v208_v35  ;;  %v1371_v37 = vmul.f32 -1.442695, %v208_v35 }
 0x2e9   :  { %1436 = vpow2.f32 %v1371_v37 }
 0x2ed   :  { %v1435_v36 = vpop.eup %1434 }
 0x2ee   :  { %231 = vrot.lane.b32.xlu2 %v1435_v36, %s1763_s4 }
 0x2ef   :  { %v1437_v38 = vpop.eup %1436 }
 0x2f0   :  { %v212_v39 = vadd.f32 1.0, %v1437_v38 }
 0x2f2   :  { %1438 = vrcp.f32 %v212_v39  ;;  %v224_v45 = vand.u32 2147483648, %v212_v39  ;;  %vm218_vm6 = vweird.f32 %v212_v39  ;;  %v222_v46 = vand.u32 2147483647, %v212_v39 }
 0x2f4   :  { %v225_v48 = vor.u32 1.1754944e-38, %v224_v45  ;;  %vm223_vm8 = vcmp.eq.f32.partialorder %v222_v46, 8.507059e+37  ;;  %v678_v46 = vld [vmem:[#allocation9 + $0x18] sm:$0xff] }
 0x2f5   :  { %727 = vmatpush.msra.mxu0 %v678_v46  ;;  %1408 = vmatpush.msra.mxu3 %v678_v46 }
 0x2f8   :  { %v1439_v40 = vpop.eup %1438 }
 0x2f9   :  { %v214_v41 = vmul.f32 %v1439_v40, %v212_v39  ;;  %vm219_vm5 = vweird.f32 %v1439_v40 }
 0x2fa   :  { %vm220_vm7 = vmor %vm218_vm6, %vm219_vm5 }
 0x2fb   :  { %v215_v42 = vsub.f32 1.0, %v214_v41 }
 0x2fd   :  { %v216_v43 = vmul.f32 %v1439_v40, %v215_v42 }
 0x2ff   :  { %v217_v44 = vadd.f32 %v1439_v40, %v216_v43 }
 0x301   :  { %v221_v47 = vsel %vm220_vm7, %v1439_v40, %v217_v44 }
 0x302   :  { %v226_v50 = vsel %vm223_vm8, %v225_v48, %v221_v47  ;;  %v677_v47 = vld [vmem:[#allocation9 + $0x10] sm:$0xff]  ;;  %v676_v48 = vld [vmem:[#allocation9 + $0x8] sm:$0xff] }
 0x303   :  { %v229_v52 = vmul.f32 %v226_v50, %v172_v28  ;;  %728 = vmatpush.msra.mxu0 %v677_v47  ;;  %1409 = vmatpush.msra.mxu3 %v677_v47 }
 0x305   :  { %729 = vmatpush.msra.mxu0 %v676_v48  ;;  %1410 = vmatpush.msra.mxu3 %v676_v48 }
 0x348   :  { %v232_v49 = vpop.permute.xlu2 %231 }
 0x349   :  { %v234_v51 = vmul.f32 %v232_v49, %v226_v50  ;;  %v675_v49 = vld [vmem:[#allocation9] sm:$0xff] }
 0x34a   :  { %730 = vmatpush.msra.mxu0 %v675_v49  ;;  %1411 = vmatpush.msra.mxu3 %v675_v49 }
 0x34b   :  { %236 = vrot.lane.b32.xlu0 %v234_v51, %s1763_s4  ;;  %v680_v51 = vld [vmem:[#allocation12] sm:$0xff] }
 0x3bd   :  { %v237_v53 = vpop.permute.xlu0 %236 }
 0x3be   :  { %v239_v54 = vadd.f32 %v237_v53, %v229_v52 }
 0x3c0   :  { %1440 = vtanh.f32 %v239_v54 }
 0x3c6   :  { %v1441_v55 = vpop.eup %1440 }
 0x3c7   :  { %242 = vrot.lane.b32.xlu1 %v1441_v55, %s1763_s4  ;;  %v389_v55 = vld [vmem:[#allocation3 + $0x20] sm:$0xff] }
 0x439   :  { %v243_v56 = vpop.permute.xlu1 %242 }
 0x43a   :  { %v245_v57 = vmul.f32 %v243_v56, %v226_v50 }
 0x43c   :  { %247 = vrot.lane.b32.xlu2 %v245_v57, %s1764_s28 }
 0x496   :  { %v248_v58 = vpop.permute.xlu2 %247 }
 0x497   :  { %251 = vst.msk [vmem:[#allocation12 + $0x8] sm:$0xff] %vm113_vm0, %v248_v58  ;;  %1372 = vmatmul.msk.f32.vlgmr.msra.gmra.mxu2 %vm113_vm0, %v248_v58 }
 0x498   :  { %608 = vmatpush.msra.mxu2 %v1844_v0 }
 0x49a   :  { %609 = vmatpush.msra.mxu2 %v1846_v1 }
 0x49c   :  { %610 = vmatpush.msra.mxu2 %v1850_v2 }
 0x49e   :  { %611 = vmatpush.msra.mxu2 %v1855_v3  ;;  %v681_v52 = vld [vmem:[#allocation12 + $0x8] sm:$0xff] }
 0x51a   :  { %v273_v60 = vpop.f32.mrf.mxu2 }
 0x51b   :  { %v276_v61 = vadd.f32 %v273_v60, %v253_v59 }
 0x51d   :  { %1442 = vtanh.f32 %v276_v61  ;;  %v1373_v63 = vmul.f32 -1.442695, %v276_v61 }
 0x51f   :  { %1444 = vpow2.f32 %v1373_v63 }
 0x523   :  { %v1443_v62 = vpop.eup %1442 }
 0x524   :  { %299 = vrot.lane.b32.xlu0 %v1443_v62, %s1763_s4 }
 0x525   :  { %v1445_v4 = vpop.eup %1444 }
 0x526   :  { %v280_v5 = vadd.f32 1.0, %v1445_v4 }
 0x528   :  { %1446 = vrcp.f32 %v280_v5  ;;  %v292_v2 = vand.u32 2147483648, %v280_v5  ;;  %vm286_vm10 = vweird.f32 %v280_v5  ;;  %v290_v3 = vand.u32 2147483647, %v280_v5 }
 0x52a   :  { %v293_v10 = vor.u32 1.1754944e-38, %v292_v2  ;;  %vm291_vm12 = vcmp.eq.f32.partialorder %v290_v3, 8.507059e+37 }
 0x52e   :  { %v1447_v6 = vpop.eup %1446 }
 0x52f   :  { %v282_v0 = vmul.f32 %v1447_v6, %v280_v5  ;;  %vm287_vm9 = vweird.f32 %v1447_v6 }
 0x530   :  { %vm288_vm11 = vmor %vm286_vm10, %vm287_vm9 }
 0x531   :  { %v283_v7 = vsub.f32 1.0, %v282_v0 }
 0x533   :  { %v284_v1 = vmul.f32 %v1447_v6, %v283_v7 }
 0x535   :  { %v285_v8 = vadd.f32 %v1447_v6, %v284_v1 }
 0x537   :  { %v289_v9 = vsel %vm288_vm11, %v1447_v6, %v285_v8 }
 0x538   :  { %v294_v12 = vsel %vm291_vm12, %v293_v10, %v289_v9 }
 0x539   :  { %v297_v14 = vmul.f32 %v294_v12, %v239_v54 }
 0x596   :  { %v300_v11 = vpop.permute.xlu0 %299 }
 0x597   :  { %v302_v13 = vmul.f32 %v300_v11, %v294_v12 }
 0x599   :  { %304 = vrot.lane.b32.xlu1 %v302_v13, %s1763_s4 }
 0x60b   :  { %v305_v15 = vpop.permute.xlu1 %304 }
 0x60c   :  { %v307_v16 = vadd.f32 %v305_v15, %v297_v14 }
 0x60e   :  { %1448 = vtanh.f32 %v307_v16 }
 0x614   :  { %v1449_v17 = vpop.eup %1448 }
 0x615   :  { %310 = vrot.lane.b32.xlu2 %v1449_v17, %s1763_s4  ;;  %v1923_v17 = vld [vmem:[#allocation11 + $0x30] sm:$0xff] }
 0x66f   :  { %v311_v18 = vpop.permute.xlu2 %310 }
 0x670   :  { %v313_v19 = vmul.f32 %v311_v18, %v294_v12  ;;  %v1927_v18 = vld [vmem:[#allocation11 + $0x28] sm:$0xff] }
 0x672   :  { %315 = vrot.lane.b32.xlu0 %v313_v19, %s1764_s28  ;;  %v1931_v19 = vld [vmem:[#allocation11 + $0x20] sm:$0xff] }
 0x6e4   :  { %v316_v20 = vpop.permute.xlu0 %315 }
 0x6e5   :  { %319 = vst.msk [vmem:[#allocation12 + $0x10] sm:$0xff] %vm113_vm0, %v316_v20  ;;  %1374 = vmatmul.msk.f32.vlgmr.msrb.gmra.mxu1 %vm113_vm0, %v316_v20 }
 0x6ec   :  { %v682_v53 = vld [vmem:[#allocation12 + $0x10] sm:$0xff] }
 0x762   :  { %v341_v22 = vpop.f32.mrf.mxu1 }
 0x763   :  { %v344_v23 = vadd.f32 %v341_v22, %v321_v21  ;;  %v672_v21 = vld [vmem:[#allocation6 + $0x8] sm:$0xff] }
 0x765   :  { %1450 = vtanh.f32 %v344_v23  ;;  %v1375_v25 = vmul.f32 -1.442695, %v344_v23  ;;  %v457_v23 = vld [vmem:[#allocation3 + $0x28] sm:$0xff] }
 0x767   :  { %1452 = vpow2.f32 %v1375_v25 }
 0x76b   :  { %v1451_v24 = vpop.eup %1450 }
 0x76c   :  { %367 = vrot.lane.b32.xlu1 %v1451_v24, %s1763_s4 }
 0x76d   :  { %v1453_v26 = vpop.eup %1452 }
 0x76e   :  { %v348_v27 = vadd.f32 1.0, %v1453_v26 }
 0x770   :  { %1454 = vrcp.f32 %v348_v27  ;;  %v360_v33 = vand.u32 2147483648, %v348_v27  ;;  %vm354_vm14 = vweird.f32 %v348_v27  ;;  %v358_v34 = vand.u32 2147483647, %v348_v27 }
 0x772   :  { %v361_v36 = vor.u32 1.1754944e-38, %v360_v33  ;;  %vm359_vm1 = vcmp.eq.f32.partialorder %v358_v34, 8.507059e+37 }
 0x776   :  { %v1455_v28 = vpop.eup %1454 }
 0x777   :  { %v350_v29 = vmul.f32 %v1455_v28, %v348_v27  ;;  %vm355_vm13 = vweird.f32 %v1455_v28 }
 0x778   :  { %vm356_vm15 = vmor %vm354_vm14, %vm355_vm13 }
 0x779   :  { %v351_v30 = vsub.f32 1.0, %v350_v29 }
 0x77b   :  { %v352_v31 = vmul.f32 %v1455_v28, %v351_v30 }
 0x77d   :  { %v353_v32 = vadd.f32 %v1455_v28, %v352_v31 }
 0x77f   :  { %v357_v35 = vsel %vm356_vm15, %v1455_v28, %v353_v32 }
 0x780   :  { %v362_v38 = vsel %vm359_vm1, %v361_v36, %v357_v35 }
 0x781   :  { %v365_v40 = vmul.f32 %v362_v38, %v307_v16  ;;  %v1921_v16 = vld [vmem:[#allocation11 + $0x38] sm:$0xff] }
 0x782   :  { %780 = vmatpush.msrb.mxu1 %v1921_v16  ;;  %918 = vmatpush.msrb.mxu3 %v1921_v16 }
 0x784   :  { %781 = vmatpush.msrb.mxu1 %v1923_v17  ;;  %919 = vmatpush.msrb.mxu3 %v1923_v17 }
 0x786   :  { %782 = vmatpush.msrb.mxu1 %v1927_v18  ;;  %920 = vmatpush.msrb.mxu3 %v1927_v18 }
 0x788   :  { %783 = vmatpush.msrb.mxu1 %v1931_v19  ;;  %921 = vmatpush.msrb.mxu3 %v1931_v19 }
 0x7de   :  { %v368_v37 = vpop.permute.xlu1 %367 }
 0x7df   :  { %v370_v39 = vmul.f32 %v368_v37, %v362_v38 }
 0x7e1   :  { %372 = vrot.lane.b32.xlu2 %v370_v39, %s1763_s4 }
 0x83b   :  { %v373_v41 = vpop.permute.xlu2 %372 }
 0x83c   :  { %v375_v42 = vadd.f32 %v373_v41, %v365_v40 }
 0x83e   :  { %1456 = vtanh.f32 %v375_v42 }
 0x844   :  { %v1457_v43 = vpop.eup %1456 }
 0x845   :  { %378 = vrot.lane.b32.xlu0 %v1457_v43, %s1763_s4 }
 0x8b7   :  { %v379_v44 = vpop.permute.xlu0 %378 }
 0x8b8   :  { %v381_v45 = vmul.f32 %v379_v44, %v362_v38  ;;  %v1959_v44 = vld [vmem:[%s2102_s5] ss:$0 sm:$0xff]  ;;  %s1765_s5 = smov 96  }
 0x8ba   :  { %383 = vrot.lane.b32.xlu1 %v381_v45, %s1764_s28 }
 0x92c   :  { %v384_v50 = vpop.permute.xlu1 %383 }
 0x92d   :  { %387 = vst.msk [vmem:[#allocation12 + $0x18] sm:$0xff] %vm113_vm0, %v384_v50  ;;  %1376 = vmatmul.msk.f32.vlgmr.msrb.gmra.mxu0 %vm113_vm0, %v384_v50 }
 0x934   :  { %v683_v54 = vld [vmem:[#allocation12 + $0x18] sm:$0xff] }
 0x935   :  { %1384 = vmatmul.msk.f32.vlgmr.msra.gmra.mxu0 %vm113_vm0, %v680_v51 }
 0x93d   :  { %1385 = vmatmul.msk.f32.gmra.mxu0 %vm113_vm0, %v681_v52 }
 0x945   :  { %1386 = vmatmul.msk.f32.gmra.mxu0 %vm113_vm0, %v682_v53 }
 0x94d   :  { %1387 = vmatmul.msk.f32.gmra.mxu0 %vm113_vm0, %v683_v54 }
 0x9aa   :  { %v409_v56 = vpop.f32.mrf.mxu0 }
 0x9ab   :  { %v412_v57 = vadd.f32 %v409_v56, %v389_v55 }
 0x9ad   :  { %1458 = vtanh.f32 %v412_v57  ;;  %v1377_v59 = vmul.f32 -1.442695, %v412_v57 }
 0x9af   :  { %1460 = vpow2.f32 %v1377_v59 }
 0x9b2   :  { %v732_v46 = vpop.f32.mrf.mxu0 }
 0x9b3   :  { %v1459_v58 = vpop.eup %1458  ;;  %v733_v48 = vadd.f32 %v1959_v44, %v732_v46 }
 0x9b4   :  { %435 = vrot.lane.b32.xlu2 %v1459_v58, %s1763_s4 }
 0x9b5   :  { %v1461_v60 = vpop.eup %1460 }
 0x9b6   :  { %v416_v61 = vadd.f32 1.0, %v1461_v60 }
 0x9b8   :  { %1462 = vrcp.f32 %v416_v61  ;;  %v428_v0 = vand.u32 2147483648, %v416_v61  ;;  %vm422_vm3 = vweird.f32 %v416_v61  ;;  %v426_v7 = vand.u32 2147483647, %v416_v61 }
 0x9ba   :  { %v429_v8 = vor.u32 1.1754944e-38, %v428_v0  ;;  %vm427_vm5 = vcmp.eq.f32.partialorder %v426_v7, 8.507059e+37 }
 0x9be   :  { %v1463_v62 = vpop.eup %1462 }
 0x9bf   :  { %v418_v63 = vmul.f32 %v1463_v62, %v416_v61  ;;  %vm423_vm2 = vweird.f32 %v1463_v62 }
 0x9c0   :  { %vm424_vm4 = vmor %vm422_vm3, %vm423_vm2 }
 0x9c1   :  { %v419_v4 = vsub.f32 1.0, %v418_v63 }
 0x9c3   :  { %v420_v5 = vmul.f32 %v1463_v62, %v419_v4 }
 0x9c5   :  { %v421_v6 = vadd.f32 %v1463_v62, %v420_v5 }
 0x9c7   :  { %v425_v1 = vsel %vm424_vm4, %v1463_v62, %v421_v6 }
 0x9c8   :  { %v430_v3 = vsel %vm427_vm5, %v429_v8, %v425_v1 }
 0x9c9   :  { %v433_v10 = vmul.f32 %v430_v3, %v375_v42 }
 0xa0e   :  { %v436_v2 = vpop.permute.xlu2 %435 }
 0xa0f   :  { %v438_v9 = vmul.f32 %v436_v2, %v430_v3  ;;  %v525_v2 = vld [vmem:[#allocation3 + $0x30] sm:$0xff] }
 0xa11   :  { %440 = vrot.lane.b32.xlu0 %v438_v9, %s1763_s4 }
 0xa83   :  { %v441_v11 = vpop.permute.xlu0 %440 }
 0xa84   :  { %v1916_v12 = vadd.f32 %v441_v11, %v433_v10  ;;  %v674_v11 = vld [vmem:[#allocation8 + $0x8] sm:$0xff] }
 0xa86   :  { %1464 = vtanh.f32 %v1916_v12 }
 0xa8c   :  { %v1465_v13 = vpop.eup %1464 }
 0xa8d   :  { %446 = vrot.lane.b32.xlu1 %v1465_v13, %s1763_s4 }
 0xaff   :  { %v447_v14 = vpop.permute.xlu1 %446 }
 0xb00   :  { %v449_v15 = vmul.f32 %v447_v14, %v430_v3 }
 0xb02   :  { %451 = vrot.lane.b32.xlu2 %v449_v15, %s1764_s28 }
 0xb5c   :  { %v452_v20 = vpop.permute.xlu2 %451 }
 0xb5d   :  { %455 = vst.msk [vmem:[#allocation12 + $0x20] sm:$0xff] %vm113_vm0, %v452_v20  ;;  %1378 = vmatmul.msk.f32.vlgmr.msra.gmra.mxu1 %vm113_vm0, %v452_v20 }
 0xb5e   :  { %985 = vmatpush.msra.mxu1 %v1921_v16 }
 0xb60   :  { %986 = vmatpush.msra.mxu1 %v1923_v17 }
 0xb62   :  { %987 = vmatpush.msra.mxu1 %v1927_v18 }
 0xb64   :  { %v684_v22 = vld [vmem:[#allocation12 + $0x20] sm:$0xff]  ;;  %988 = vmatpush.msra.mxu1 %v1931_v19 }
 0xb65   :  { %1388 = vmatmul.msk.f32.vlgmr.msra.gmra.mxu3 %vm113_vm0, %v684_v22  ;;  %1392 = vmatmul.msk.f32.vlgmr.msrb.gmra.mxu1 %vm113_vm0, %v672_v21 }
 0xb66   :  { %1119 = vmatpush.msra.mxu3 %v1921_v16  ;;  %1186 = vmatpush.msrb.mxu1 %v1921_v16 }
 0xb68   :  { %1120 = vmatpush.msra.mxu3 %v1923_v17  ;;  %1187 = vmatpush.msrb.mxu1 %v1923_v17 }
 0xb6a   :  { %1121 = vmatpush.msra.mxu3 %v1927_v18  ;;  %1188 = vmatpush.msrb.mxu1 %v1927_v18 }
 0xb6c   :  { %1122 = vmatpush.msra.mxu3 %v1931_v19  ;;  %1189 = vmatpush.msrb.mxu1 %v1931_v19 }
 0xbda   :  { %v477_v24 = vpop.f32.mrf.mxu1 }
 0xbdb   :  { %v480_v25 = vadd.f32 %v477_v24, %v457_v23 }
 0xbdd   :  { %1466 = vtanh.f32 %v480_v25  ;;  %v1379_v27 = vmul.f32 -1.442695, %v480_v25 }
 0xbdf   :  { %1468 = vpow2.f32 %v1379_v27 }
 0xbe2   :  { %v785_v47 = vpop.f32.mrf.mxu1 }
 0xbe3   :  { %v1467_v26 = vpop.eup %1466  ;;  %v788_v49 = vadd.f32 %v785_v47, %v733_v48  ;;  %v593_v48 = vld [vmem:[#allocation3 + $0x38] sm:$0xff] }
 0xbe4   :  { %503 = vrot.lane.b32.xlu0 %v1467_v26, %s1763_s4 }
 0xbe5   :  { %v1469_v28 = vpop.eup %1468  ;;  %v1393_v52 = vmul.f32 -1.442695, %v788_v49 }
 0xbe6   :  { %v484_v29 = vadd.f32 1.0, %v1469_v28 }
 0xbe8   :  { %1470 = vrcp.f32 %v484_v29  ;;  %v496_v35 = vand.u32 2147483648, %v484_v29  ;;  %vm490_vm7 = vweird.f32 %v484_v29  ;;  %v494_v36 = vand.u32 2147483647, %v484_v29 }
 0xbea   :  { %v497_v38 = vor.u32 1.1754944e-38, %v496_v35  ;;  %vm495_vm9 = vcmp.eq.f32.partialorder %v494_v36, 8.507059e+37 }
 0xbee   :  { %v1471_v30 = vpop.eup %1470 }
 0xbef   :  { %v486_v31 = vmul.f32 %v1471_v30, %v484_v29  ;;  %vm491_vm6 = vweird.f32 %v1471_v30 }
 0xbf0   :  { %vm492_vm8 = vmor %vm490_vm7, %vm491_vm6 }
 0xbf1   :  { %v487_v32 = vsub.f32 1.0, %v486_v31 }
 0xbf3   :  { %v488_v33 = vmul.f32 %v1471_v30, %v487_v32 }
 0xbf5   :  { %v489_v34 = vadd.f32 %v1471_v30, %v488_v33 }
 0xbf7   :  { %v493_v37 = vsel %vm492_vm8, %v1471_v30, %v489_v34 }
 0xbf8   :  { %v498_v40 = vsel %vm495_vm9, %v497_v38, %v493_v37 }
 0xbf9   :  { %v501_v42 = vmul.f32 %v498_v40, %v1916_v12 }
 0xc56   :  { %v504_v39 = vpop.permute.xlu0 %503 }
 0xc57   :  { %v506_v41 = vmul.f32 %v504_v39, %v498_v40 }
 0xc59   :  { %508 = vrot.lane.b32.xlu1 %v506_v41, %s1763_s4 }
 0xccb   :  { %v509_v43 = vpop.permute.xlu1 %508 }
 0xccc   :  { %v1961_v45 = vadd.f32 %v509_v43, %v501_v42 }
 0xcce   :  { %1472 = vtanh.f32 %v1961_v45 }
 0xccf   :  { %1474 = vtanh.f32 %v788_v49 }
 0xcd0   :  { %1476 = vpow2.f32 %v1393_v52 }
 0xcd4   :  { %v1473_v50 = vpop.eup %1472 }
 0xcd5   :  { %514 = vrot.lane.b32.xlu2 %v1473_v50, %s1763_s4  ;;  %v1475_v51 = vpop.eup %1474 }
 0xcd6   :  { %v1477_v53 = vpop.eup %1476 }
 0xcd7   :  { %v792_v54 = vadd.f32 1.0, %v1477_v53 }
 0xcd9   :  { %1478 = vrcp.f32 %v792_v54  ;;  %v804_v62 = vand.u32 2147483648, %v792_v54  ;;  %vm798_vm11 = vweird.f32 %v792_v54  ;;  %v802_v63 = vand.u32 2147483647, %v792_v54 }
 0xcdb   :  { %v805_v5 = vor.u32 1.1754944e-38, %v804_v62  ;;  %vm803_vm13 = vcmp.eq.f32.partialorder %v802_v63, 8.507059e+37 }
 0xcdd   :  { %815 = vrot.lane.b32.xlu2 %v1475_v51, %s1763_s4  ;;  %v735_v51 = vpop.f32.mrf.mxu0 }
 0xcde   :  { %v736_v52 = vadd.f32 %v1959_v44, %v735_v51 }
 0xcdf   :  { %v1479_v55 = vpop.eup %1478 }
 0xce0   :  { %v794_v56 = vmul.f32 %v1479_v55, %v792_v54  ;;  %vm799_vm10 = vweird.f32 %v1479_v55 }
 0xce1   :  { %vm800_vm12 = vmor %vm798_vm11, %vm799_vm10 }
 0xce2   :  { %v795_v57 = vsub.f32 1.0, %v794_v56 }
 0xce4   :  { %v796_v58 = vmul.f32 %v1479_v55, %v795_v57 }
 0xce6   :  { %v797_v61 = vadd.f32 %v1479_v55, %v796_v58 }
 0xce8   :  { %v801_v4 = vsel %vm800_vm12, %v1479_v55, %v797_v61 }
 0xce9   :  { %v806_v0 = vsel %vm803_vm13, %v805_v5, %v801_v4 }
 0xd2f   :  { %v515_v59 = vpop.permute.xlu2 %514 }
 0xd30   :  { %v517_v60 = vmul.f32 %v515_v59, %v498_v40 }
 0xd32   :  { %519 = vrot.lane.b32.xlu0 %v517_v60, %s1764_s28 }
 0xd37   :  { %v816_v6 = vpop.permute.xlu2 %815 }
 0xd38   :  { %v818_v7 = vmul.f32 %v816_v6, %v806_v0 }
 0xd3a   :  { %820 = vrot.lane.b32.xlu2 %v818_v7, %s1763_s4 }
 0xd94   :  { %v821_v33 = vpop.permute.xlu2 %820 }
 0xda4   :  { %v520_v1 = vpop.permute.xlu0 %519 }
 0xda5   :  { %523 = vst.msk [vmem:[#allocation12 + $0x28] sm:$0xff] %vm113_vm0, %v520_v1  ;;  %1380 = vmatmul.msk.f32.vlgmr.msrb.gmra.mxu2 %vm113_vm0, %v520_v1 }
 0xda6   :  { %851 = vmatpush.msrb.mxu2 %v1921_v16 }
 0xda8   :  { %852 = vmatpush.msrb.mxu2 %v1923_v17 }
 0xdaa   :  { %853 = vmatpush.msrb.mxu2 %v1927_v18 }
 0xdac   :  { %v685_v8 = vld [vmem:[#allocation12 + $0x28] sm:$0xff]  ;;  %854 = vmatpush.msrb.mxu2 %v1931_v19 }
 0xdad   :  { %1389 = vmatmul.msk.f32.gmra.mxu3 %vm113_vm0, %v685_v8 }
 0xe28   :  { %v545_v3 = vpop.f32.mrf.mxu2 }
 0xe29   :  { %v548_v9 = vadd.f32 %v545_v3, %v525_v2 }
 0xe2b   :  { %1480 = vtanh.f32 %v548_v9  ;;  %v1381_v12 = vmul.f32 -1.442695, %v548_v9 }
 0xe2d   :  { %1482 = vpow2.f32 %v1381_v12 }
 0xe31   :  { %v1481_v10 = vpop.eup %1480 }
 0xe32   :  { %571 = vrot.lane.b32.xlu1 %v1481_v10, %s1763_s4 }
 0xe33   :  { %v1483_v13 = vpop.eup %1482 }
 0xe34   :  { %v552_v14 = vadd.f32 1.0, %v1483_v13 }
 0xe36   :  { %1484 = vrcp.f32 %v552_v14  ;;  %v564_v24 = vand.u32 2147483648, %v552_v14  ;;  %vm558_vm15 = vweird.f32 %v552_v14  ;;  %v562_v25 = vand.u32 2147483647, %v552_v14 }
 0xe38   :  { %v565_v27 = vor.u32 1.1754944e-38, %v564_v24  ;;  %vm563_vm2 = vcmp.eq.f32.partialorder %v562_v25, 8.507059e+37 }
 0xe3a   :  { %810 = vrot.lane.b32.xlu1 %v674_v11, %s1763_s4 }
 0xe3c   :  { %v1485_v15 = vpop.eup %1484 }
 0xe3d   :  { %v554_v20 = vmul.f32 %v1485_v15, %v552_v14  ;;  %vm559_vm14 = vweird.f32 %v1485_v15 }
 0xe3e   :  { %vm560_vm1 = vmor %vm558_vm15, %vm559_vm14 }
 0xe3f   :  { %v555_v21 = vsub.f32 1.0, %v554_v20 }
 0xe41   :  { %v556_v22 = vmul.f32 %v1485_v15, %v555_v21 }
 0xe43   :  { %v557_v23 = vadd.f32 %v1485_v15, %v556_v22 }
 0xe45   :  { %v561_v26 = vsel %vm560_vm1, %v1485_v15, %v557_v23 }
 0xe46   :  { %v566_v29 = vsel %vm563_vm2, %v565_v27, %v561_v26 }
 0xe47   :  { %v569_v36 = vmul.f32 %v566_v29, %v1961_v45 }
 0xea4   :  { %v572_v28 = vpop.permute.xlu1 %571 }
 0xea5   :  { %v574_v30 = vmul.f32 %v572_v28, %v566_v29 }
 0xea7   :  { %576 = vrot.lane.b32.xlu0 %v574_v30, %s1763_s4 }
 0xeac   :  { %v811_v31 = vpop.permute.xlu1 %810 }
 0xead   :  { %v813_v32 = vmul.f32 %v811_v31, %v806_v0 }
 0xeaf   :  { %v1979_v34 = vadd.f32 %v821_v33, %v813_v32 }
 0xeb1   :  { %1486 = vtanh.f32 %v1979_v34 }
 0xeb7   :  { %v1487_v35 = vpop.eup %1486 }
 0xeb8   :  { %826 = vrot.lane.b32.xlu1 %v1487_v35, %s1763_s4 }
 0xf19   :  { %v577_v37 = vpop.permute.xlu0 %576 }
 0xf1a   :  { %v1984_v38 = vadd.f32 %v577_v37, %v569_v36 }
 0xf1c   :  { %1488 = vtanh.f32 %v1984_v38 }
 0xf22   :  { %v1489_v39 = vpop.eup %1488 }
 0xf23   :  { %582 = vrot.lane.b32.xlu0 %v1489_v39, %s1763_s4 }
 0xf2a   :  { %v827_v40 = vpop.permute.xlu1 %826 }
 0xf2b   :  { %v829_v41 = vmul.f32 %v827_v40, %v806_v0 }
 0xf2d   :  { %831 = vrot.lane.b32.xlu0 %v829_v41, %s1764_s28 }
 0xf95   :  { %v583_v42 = vpop.permute.xlu0 %582 }
 0xf96   :  { %v585_v43 = vmul.f32 %v583_v42, %v566_v29  ;;  %v738_v42 = vpop.f32.mrf.mxu0 }
 0xf98   :  { %587 = vrot.lane.b32.xlu2 %v585_v43, %s1764_s28  ;;  %v739_v43 = vadd.f32 %v1959_v44, %v738_v42 }
 0xf9f   :  { %v832_v46 = vpop.permute.xlu0 %831 }
 0xfa0   :  { %834 = vst.msk [vmem:[#allocation12] sm:$0xff] %vm113_vm0, %v832_v46 }
 0xff2   :  { %v588_v45 = vpop.permute.xlu2 %587 }
 0xff3   :  { %591 = vst.msk [vmem:[#allocation12 + $0x30] sm:$0xff] %vm113_vm0, %v588_v45  ;;  %1382 = vmatmul.msk.f32.vlgmr.msra.gmra.mxu2 %vm113_vm0, %v588_v45 }
 0xff4   :  { %1052 = vmatpush.msra.mxu2 %v1921_v16 }
 0xff6   :  { %1053 = vmatpush.msra.mxu2 %v1923_v17 }
 0xff8   :  { %1054 = vmatpush.msra.mxu2 %v1927_v18 }
 0xffa   :  { %v686_v47 = vld [vmem:[#allocation12 + $0x30] sm:$0xff]  ;;  %1055 = vmatpush.msra.mxu2 %v1931_v19 }
 0xffb   :  { %1390 = vmatmul.msk.f32.gmra.mxu3 %vm113_vm0, %v686_v47  ;;  %1394 = vmatmul.msk.f32.vlgmr.msrb.gmra.mxu2 %vm113_vm0, %v832_v46 }
 0xffc   :  { %1253 = vmatpush.msrb.mxu2 %v1921_v16 }
 0xffe   :  { %1254 = vmatpush.msrb.mxu2 %v1923_v17 }
0x1000   :  { %1255 = vmatpush.msrb.mxu2 %v1927_v18 }
0x1002   :  { %1256 = vmatpush.msrb.mxu2 %v1931_v19 }
0x1076   :  { %v613_v49 = vpop.f32.mrf.mxu2 }
0x1077   :  { %v616_v50 = vadd.f32 %v613_v49, %v593_v48 }
0x1079   :  { %1490 = vtanh.f32 %v616_v50  ;;  %v1383_v56 = vmul.f32 -1.442695, %v616_v50 }
0x107e   :  { %v856_v53 = vpop.f32.mrf.mxu2 }
0x107f   :  { %v1491_v54 = vpop.eup %1490  ;;  %v859_v55 = vadd.f32 %v856_v53, %v736_v52 }
0x1080   :  { %639 = vrot.lane.b32.xlu1 %v1491_v54, %s1763_s4 }
0x1081   :  { %1492 = vtanh.f32 %v859_v55  ;;  %v1395_v17 = vmul.f32 -1.442695, %v859_v55 }
0x1083   :  { %1494 = vpow2.f32 %v1395_v17 }
0x1087   :  { %v1493_v16 = vpop.eup %1492 }
0x1088   :  { %882 = vrot.lane.b32.xlu2 %v1493_v16, %s1763_s4 }
0x1089   :  { %v1495_v18 = vpop.eup %1494 }
0x108a   :  { %v863_v19 = vadd.f32 1.0, %v1495_v18 }
0x108c   :  { %1496 = vrcp.f32 %v863_v19  ;;  %v875_v5 = vand.u32 2147483648, %v863_v19  ;;  %vm869_vm4 = vweird.f32 %v863_v19  ;;  %v873_v6 = vand.u32 2147483647, %v863_v19 }
0x108d   :  { %1498 = vpow2.f32 %v1383_v56 }
0x108e   :  { %v876_v1 = vor.u32 1.1754944e-38, %v875_v5  ;;  %vm874_vm6 = vcmp.eq.f32.partialorder %v873_v6, 8.507059e+37  ;;  %v741_v6 = vpop.f32.mrf.mxu0 }
0x1092   :  { %v1497_v57 = vpop.eup %1496 }
0x1093   :  { %v1499_v58 = vpop.eup %1498  ;;  %v865_v59 = vmul.f32 %v1497_v57, %v863_v19  ;;  %vm870_vm3 = vweird.f32 %v1497_v57 }
0x1094   :  { %v620_v60 = vadd.f32 1.0, %v1499_v58  ;;  %vm871_vm5 = vmor %vm869_vm4, %vm870_vm3 }
0x1095   :  { %v866_v61 = vsub.f32 1.0, %v865_v59 }
0x1096   :  { %1500 = vrcp.f32 %v620_v60  ;;  %v632_v12 = vand.u32 2147483648, %v620_v60  ;;  %vm626_vm8 = vweird.f32 %v620_v60  ;;  %v630_v13 = vand.u32 2147483647, %v620_v60 }
0x1097   :  { %v867_v62 = vmul.f32 %v1497_v57, %v866_v61 }
0x1098   :  { %v633_v15 = vor.u32 1.1754944e-38, %v632_v12  ;;  %vm631_vm10 = vcmp.eq.f32.partialorder %v630_v13, 8.507059e+37 }
0x1099   :  { %v868_v63 = vadd.f32 %v1497_v57, %v867_v62 }
0x109b   :  { %v872_v0 = vsel %vm871_vm5, %v1497_v57, %v868_v63 }
0x109c   :  { %v1501_v4 = vpop.eup %1500  ;;  %v877_v2 = vsel %vm874_vm6, %v876_v1, %v872_v0  ;;  %v742_v0 = vadd.f32 %v1959_v44, %v741_v6 }
0x109d   :  { %v622_v7 = vmul.f32 %v1501_v4, %v620_v60  ;;  %vm627_vm7 = vweird.f32 %v1501_v4  ;;  %v880_v23 = vmul.f32 %v877_v2, %v1979_v34 }
0x109e   :  { %vm628_vm9 = vmor %vm626_vm8, %vm627_vm7 }
0x109f   :  { %v623_v9 = vsub.f32 1.0, %v622_v7 }
0x10a1   :  { %v624_v10 = vmul.f32 %v1501_v4, %v623_v9 }
0x10a3   :  { %v625_v11 = vadd.f32 %v1501_v4, %v624_v10 }
0x10a5   :  { %v629_v14 = vsel %vm628_vm9, %v1501_v4, %v625_v11 }
0x10a6   :  { %v634_v20 = vsel %vm631_vm10, %v633_v15, %v629_v14 }
0x10a7   :  { %v637_v27 = vmul.f32 %v634_v20, %v1984_v38  ;;  %v2022_v38 = vpop.f32.mrf.mxu3 }
0x10af   :  { %v2024_v39 = vpop.f32.mrf.mxu3 }
0x10b7   :  { %v2026_v40 = vpop.f32.mrf.mxu3 }
0x10e2   :  { %v883_v8 = vpop.permute.xlu2 %882 }
0x10e3   :  { %v885_v3 = vmul.f32 %v883_v8, %v877_v2 }
0x10e5   :  { %887 = vrot.lane.b32.xlu1 %v885_v3, %s1763_s4 }
0x10f2   :  { %v640_v21 = vpop.permute.xlu1 %639 }
0x10f3   :  { %v642_v22 = vmul.f32 %v640_v21, %v634_v20 }
0x10f5   :  { %644 = vrot.lane.b32.xlu0 %v642_v22, %s1763_s4 }
0x1157   :  { %v888_v24 = vpop.permute.xlu1 %887 }
0x1158   :  { %v890_v25 = vadd.f32 %v888_v24, %v880_v23 }
0x115a   :  { %1502 = vtanh.f32 %v890_v25 }
0x1160   :  { %v1503_v26 = vpop.eup %1502 }
0x1161   :  { %893 = vrot.lane.b32.xlu0 %v1503_v26, %s1763_s4 }
0x1167   :  { %v645_v28 = vpop.permute.xlu0 %644 }
0x1168   :  { %v2011_v29 = vadd.f32 %v645_v28, %v637_v27 }
0x116a   :  { %1504 = vtanh.f32 %v2011_v29 }
0x1170   :  { %v1505_v30 = vpop.eup %1504 }
0x1171   :  { %650 = vrot.lane.b32.xlu2 %v1505_v30, %s1763_s4 }
0x11cb   :  { %v651_v31 = vpop.permute.xlu2 %650 }
0x11cc   :  { %v653_v32 = vmul.f32 %v651_v31, %v634_v20 }
0x11ce   :  { %655 = vrot.lane.b32.xlu1 %v653_v32, %s1764_s28 }
0x11d3   :  { %v894_v33 = vpop.permute.xlu0 %893 }
0x11d4   :  { %v896_v34 = vmul.f32 %v894_v33, %v877_v2 }
0x11d6   :  { %898 = vrot.lane.b32.xlu2 %v896_v34, %s1764_s28  ;;  %v745_v34 = vadd.f32 %v1959_v44, %v2022_v38 }
0x1230   :  { %v899_v35 = vpop.permute.xlu2 %898 }
0x1231   :  { %901 = vst.msk [vmem:[#allocation12 + $0x8] sm:$0xff] %vm113_vm0, %v899_v35 }
0x1240   :  { %v656_v36 = vpop.permute.xlu1 %655 }
0x1241   :  { %659 = vst.msk [vmem:[#allocation12 + $0x38] sm:$0xff] %vm113_vm0, %v656_v36 }
0x1242   :  { %660 = vst.msk [vmem:[#allocation13] sm:$0xff] %vm113_vm0, %v656_v36 }
0x1248   :  { %v687_v37 = vld [vmem:[#allocation12 + $0x38] sm:$0xff] }
0x1249   :  { %1391 = vmatmul.msk.f32.gmra.mxu3 %vm113_vm0, %v687_v37 }
0x1251   :  { %1396 = vmatmul.msk.f32.vlgmr.msrb.gmra.mxu3 %vm113_vm0, %v899_v35 }
0x12cc   :  { %v2028_v41 = vpop.f32.mrf.mxu3 }
0x12d4   :  { %v923_v46 = vpop.f32.mrf.mxu3 }
0x12d5   :  { %v926_v45 = vadd.f32 %v923_v46, %v739_v43 }
0x12d7   :  { %1506 = vtanh.f32 %v926_v45  ;;  %v1397_v48 = vmul.f32 -1.442695, %v926_v45 }
0x12d9   :  { %1508 = vpow2.f32 %v1397_v48 }
0x12dd   :  { %v1507_v47 = vpop.eup %1506 }
0x12de   :  { %949 = vrot.lane.b32.xlu0 %v1507_v47, %s1763_s4 }
0x12df   :  { %v1509_v49 = vpop.eup %1508 }
0x12e0   :  { %v930_v50 = vadd.f32 1.0, %v1509_v49 }
0x12e2   :  { %1510 = vrcp.f32 %v930_v50  ;;  %v942_v16 = vand.u32 2147483648, %v930_v50  ;;  %vm936_vm12 = vweird.f32 %v930_v50  ;;  %v940_v17 = vand.u32 2147483647, %v930_v50 }
0x12e4   :  { %v943_v19 = vor.u32 1.1754944e-38, %v942_v16  ;;  %vm941_vm14 = vcmp.eq.f32.partialorder %v940_v17, 8.507059e+37 }
0x12e8   :  { %v1511_v51 = vpop.eup %1510 }
0x12e9   :  { %v932_v52 = vmul.f32 %v1511_v51, %v930_v50  ;;  %vm937_vm11 = vweird.f32 %v1511_v51 }
0x12ea   :  { %vm938_vm13 = vmor %vm936_vm12, %vm937_vm11 }
0x12eb   :  { %v933_v53 = vsub.f32 1.0, %v932_v52 }
0x12ed   :  { %v934_v54 = vmul.f32 %v1511_v51, %v933_v53 }
0x12ef   :  { %v935_v55 = vadd.f32 %v1511_v51, %v934_v54 }
0x12f1   :  { %v939_v18 = vsel %vm938_vm13, %v1511_v51, %v935_v55 }
0x12f2   :  { %v944_v57 = vsel %vm941_vm14, %v943_v19, %v939_v18 }
0x12f3   :  { %v947_v59 = vmul.f32 %v944_v57, %v890_v25 }
0x1350   :  { %v950_v56 = vpop.permute.xlu0 %949 }
0x1351   :  { %v952_v58 = vmul.f32 %v950_v56, %v944_v57 }
0x1353   :  { %954 = vrot.lane.b32.xlu1 %v952_v58, %s1763_s4 }
0x13c5   :  { %v955_v60 = vpop.permute.xlu1 %954 }
0x13c6   :  { %v957_v61 = vadd.f32 %v955_v60, %v947_v59  ;;  %v748_v60 = vadd.f32 %v1959_v44, %v2024_v39 }
0x13c8   :  { %1512 = vtanh.f32 %v957_v61 }
0x13ce   :  { %v1513_v62 = vpop.eup %1512 }
0x13cf   :  { %960 = vrot.lane.b32.xlu2 %v1513_v62, %s1763_s4 }
0x1429   :  { %v961_v63 = vpop.permute.xlu2 %960 }
0x142a   :  { %v963_v4 = vmul.f32 %v961_v63, %v944_v57 }
0x142c   :  { %965 = vrot.lane.b32.xlu0 %v963_v4, %s1764_s28 }
0x149e   :  { %v966_v5 = vpop.permute.xlu0 %965 }
0x149f   :  { %968 = vst.msk [vmem:[#allocation12 + $0x10] sm:$0xff] %vm113_vm0, %v966_v5  ;;  %1398 = vmatmul.msk.f32.vlgmr.msra.gmra.mxu1 %vm113_vm0, %v966_v5 }
0x151c   :  { %v990_v7 = vpop.f32.mrf.mxu1 }
0x151d   :  { %v993_v1 = vadd.f32 %v990_v7, %v742_v0 }
0x151f   :  { %1514 = vtanh.f32 %v993_v1  ;;  %v1399_v2 = vmul.f32 -1.442695, %v993_v1 }
0x1521   :  { %1516 = vpow2.f32 %v1399_v2 }
0x1525   :  { %v1515_v8 = vpop.eup %1514 }
0x1526   :  { %1016 = vrot.lane.b32.xlu1 %v1515_v8, %s1763_s4 }
0x1527   :  { %v1517_v3 = vpop.eup %1516 }
0x1528   :  { %v997_v9 = vadd.f32 1.0, %v1517_v3 }
0x152a   :  { %1518 = vrcp.f32 %v997_v9  ;;  %v1009_v15 = vand.u32 2147483648, %v997_v9  ;;  %vm1003_vm1 = vweird.f32 %v997_v9  ;;  %v1007_v20 = vand.u32 2147483647, %v997_v9 }
0x152c   :  { %v1010_v22 = vor.u32 1.1754944e-38, %v1009_v15  ;;  %vm1008_vm3 = vcmp.eq.f32.partialorder %v1007_v20, 8.507059e+37 }
0x1530   :  { %v1519_v10 = vpop.eup %1518 }
0x1531   :  { %v999_v11 = vmul.f32 %v1519_v10, %v997_v9  ;;  %vm1004_vm15 = vweird.f32 %v1519_v10 }
0x1532   :  { %vm1005_vm2 = vmor %vm1003_vm1, %vm1004_vm15 }
0x1533   :  { %v1000_v12 = vsub.f32 1.0, %v999_v11 }
0x1535   :  { %v1001_v13 = vmul.f32 %v1519_v10, %v1000_v12 }
0x1537   :  { %v1002_v14 = vadd.f32 %v1519_v10, %v1001_v13 }
0x1539   :  { %v1006_v21 = vsel %vm1005_vm2, %v1519_v10, %v1002_v14 }
0x153a   :  { %v1011_v24 = vsel %vm1008_vm3, %v1010_v22, %v1006_v21 }
0x153b   :  { %v1014_v26 = vmul.f32 %v1011_v24, %v957_v61 }
0x1598   :  { %v1017_v23 = vpop.permute.xlu1 %1016 }
0x1599   :  { %v1019_v25 = vmul.f32 %v1017_v23, %v1011_v24 }
0x159b   :  { %1021 = vrot.lane.b32.xlu2 %v1019_v25, %s1763_s4  ;;  %v751_v25 = vadd.f32 %v1959_v44, %v2026_v40 }
0x15f5   :  { %v1022_v27 = vpop.permute.xlu2 %1021 }
0x15f6   :  { %v1024_v28 = vadd.f32 %v1022_v27, %v1014_v26 }
0x15f8   :  { %1520 = vtanh.f32 %v1024_v28 }
0x15fe   :  { %v1521_v30 = vpop.eup %1520 }
0x15ff   :  { %1027 = vrot.lane.b32.xlu0 %v1521_v30, %s1763_s4 }
0x1671   :  { %v1028_v31 = vpop.permute.xlu0 %1027 }
0x1672   :  { %v1030_v32 = vmul.f32 %v1028_v31, %v1011_v24 }
0x1674   :  { %1032 = vrot.lane.b32.xlu1 %v1030_v32, %s1764_s28 }
0x16e6   :  { %v1033_v33 = vpop.permute.xlu1 %1032 }
0x16e7   :  { %1035 = vst.msk [vmem:[#allocation12 + $0x18] sm:$0xff] %vm113_vm0, %v1033_v33  ;;  %1400 = vmatmul.msk.f32.vlgmr.msra.gmra.mxu2 %vm113_vm0, %v1033_v33 }
0x176a   :  { %v1057_v35 = vpop.f32.mrf.mxu2 }
0x176b   :  { %v1060_v36 = vadd.f32 %v1057_v35, %v745_v34 }
0x176d   :  { %1522 = vtanh.f32 %v1060_v36  ;;  %v1401_v42 = vmul.f32 -1.442695, %v1060_v36 }
0x176f   :  { %1524 = vpow2.f32 %v1401_v42 }
0x1773   :  { %v1523_v37 = vpop.eup %1522 }
0x1774   :  { %1083 = vrot.lane.b32.xlu2 %v1523_v37, %s1763_s4 }
0x1775   :  { %v1525_v43 = vpop.eup %1524 }
0x1776   :  { %v1064_v46 = vadd.f32 1.0, %v1525_v43 }
0x1778   :  { %1526 = vrcp.f32 %v1064_v46  ;;  %v1076_v51 = vand.u32 2147483648, %v1064_v46  ;;  %vm1070_vm5 = vweird.f32 %v1064_v46  ;;  %v1074_v38 = vand.u32 2147483647, %v1064_v46 }
0x177a   :  { %v1077_v53 = vor.u32 1.1754944e-38, %v1076_v51  ;;  %vm1075_vm7 = vcmp.eq.f32.partialorder %v1074_v38, 8.507059e+37 }
0x177e   :  { %v1527_v45 = vpop.eup %1526 }
0x177f   :  { %v1066_v47 = vmul.f32 %v1527_v45, %v1064_v46  ;;  %vm1071_vm4 = vweird.f32 %v1527_v45 }
0x1780   :  { %vm1072_vm6 = vmor %vm1070_vm5, %vm1071_vm4 }
0x1781   :  { %v1067_v48 = vsub.f32 1.0, %v1066_v47 }
0x1783   :  { %v1068_v49 = vmul.f32 %v1527_v45, %v1067_v48 }
0x1785   :  { %v1069_v50 = vadd.f32 %v1527_v45, %v1068_v49 }
0x1787   :  { %v1073_v52 = vsel %vm1072_vm6, %v1527_v45, %v1069_v50 }
0x1788   :  { %v1078_v55 = vsel %vm1075_vm7, %v1077_v53, %v1073_v52 }
0x1789   :  { %v1081_v17 = vmul.f32 %v1078_v55, %v1024_v28 }
0x17ce   :  { %v1084_v54 = vpop.permute.xlu2 %1083 }
0x17cf   :  { %v1086_v16 = vmul.f32 %v1084_v54, %v1078_v55 }
0x17d1   :  { %1088 = vrot.lane.b32.xlu0 %v1086_v16, %s1763_s4 }
0x1843   :  { %v1089_v18 = vpop.permute.xlu0 %1088 }
0x1844   :  { %v1091_v19 = vadd.f32 %v1089_v18, %v1081_v17 }
0x1846   :  { %1528 = vtanh.f32 %v1091_v19 }
0x184c   :  { %v1529_v56 = vpop.eup %1528 }
0x184d   :  { %1094 = vrot.lane.b32.xlu1 %v1529_v56, %s1763_s4 }
0x18bf   :  { %v1095_v57 = vpop.permute.xlu1 %1094 }
0x18c0   :  { %v1097_v58 = vmul.f32 %v1095_v57, %v1078_v55  ;;  %v754_v55 = vadd.f32 %v1959_v44, %v2028_v41 }
0x18c2   :  { %1099 = vrot.lane.b32.xlu2 %v1097_v58, %s1764_s28 }
0x191c   :  { %v1100_v59 = vpop.permute.xlu2 %1099 }
0x191d   :  { %1102 = vst.msk [vmem:[#allocation12 + $0x20] sm:$0xff] %vm113_vm0, %v1100_v59  ;;  %1402 = vmatmul.msk.f32.vlgmr.msra.gmra.mxu3 %vm113_vm0, %v1100_v59 }
0x19a0   :  { %v1124_v61 = vpop.f32.mrf.mxu3 }
0x19a1   :  { %v1127_v62 = vadd.f32 %v1124_v61, %v748_v60 }
0x19a3   :  { %1530 = vtanh.f32 %v1127_v62  ;;  %v1403_v4 = vmul.f32 -1.442695, %v1127_v62 }
0x19a5   :  { %1532 = vpow2.f32 %v1403_v4 }
0x19a9   :  { %v1531_v63 = vpop.eup %1530 }
0x19aa   :  { %1150 = vrot.lane.b32.xlu0 %v1531_v63, %s1763_s4 }
0x19ab   :  { %v1533_v5 = vpop.eup %1532 }
0x19ac   :  { %v1131_v6 = vadd.f32 1.0, %v1533_v5 }
0x19ae   :  { %1534 = vrcp.f32 %v1131_v6  ;;  %v1143_v3 = vand.u32 2147483648, %v1131_v6  ;;  %vm1137_vm9 = vweird.f32 %v1131_v6  ;;  %v1141_v39 = vand.u32 2147483647, %v1131_v6 }
0x19b0   :  { %v1144_v10 = vor.u32 1.1754944e-38, %v1143_v3  ;;  %vm1142_vm11 = vcmp.eq.f32.partialorder %v1141_v39, 8.507059e+37 }
0x19b4   :  { %v1535_v0 = vpop.eup %1534 }
0x19b5   :  { %v1133_v7 = vmul.f32 %v1535_v0, %v1131_v6  ;;  %vm1138_vm8 = vweird.f32 %v1535_v0 }
0x19b6   :  { %vm1139_vm10 = vmor %vm1137_vm9, %vm1138_vm8 }
0x19b7   :  { %v1134_v1 = vsub.f32 1.0, %v1133_v7 }
0x19b9   :  { %v1135_v8 = vmul.f32 %v1535_v0, %v1134_v1 }
0x19bb   :  { %v1136_v2 = vadd.f32 %v1535_v0, %v1135_v8 }
0x19bd   :  { %v1140_v9 = vsel %vm1139_vm10, %v1535_v0, %v1136_v2 }
0x19be   :  { %v1145_v12 = vsel %vm1142_vm11, %v1144_v10, %v1140_v9 }
0x19bf   :  { %v1148_v14 = vmul.f32 %v1145_v12, %v1091_v19 }
0x1a1c   :  { %v1151_v11 = vpop.permute.xlu0 %1150 }
0x1a1d   :  { %v1153_v13 = vmul.f32 %v1151_v11, %v1145_v12 }
0x1a1f   :  { %1155 = vrot.lane.b32.xlu1 %v1153_v13, %s1763_s4 }
0x1a91   :  { %v1156_v15 = vpop.permute.xlu1 %1155 }
0x1a92   :  { %v1158_v20 = vadd.f32 %v1156_v15, %v1148_v14 }
0x1a94   :  { %1536 = vtanh.f32 %v1158_v20 }
0x1a9a   :  { %v1537_v21 = vpop.eup %1536 }
0x1a9b   :  { %1161 = vrot.lane.b32.xlu2 %v1537_v21, %s1763_s4 }
0x1af5   :  { %v1162_v22 = vpop.permute.xlu2 %1161 }
0x1af6   :  { %v1164_v23 = vmul.f32 %v1162_v22, %v1145_v12 }
0x1af8   :  { %1166 = vrot.lane.b32.xlu0 %v1164_v23, %s1764_s28 }
0x1b6a   :  { %v1167_v24 = vpop.permute.xlu0 %1166 }
0x1b6b   :  { %1169 = vst.msk [vmem:[#allocation12 + $0x28] sm:$0xff] %vm113_vm0, %v1167_v24  ;;  %1404 = vmatmul.msk.f32.vlgmr.msrb.gmra.mxu1 %vm113_vm0, %v1167_v24 }
0x1be8   :  { %v1191_v26 = vpop.f32.mrf.mxu1 }
0x1be9   :  { %v1194_v27 = vadd.f32 %v1191_v26, %v751_v25 }
0x1beb   :  { %1538 = vtanh.f32 %v1194_v27  ;;  %v1405_v30 = vmul.f32 -1.442695, %v1194_v27 }
0x1bed   :  { %1540 = vpow2.f32 %v1405_v30 }
0x1bf1   :  { %v1539_v28 = vpop.eup %1538 }
0x1bf2   :  { %1217 = vrot.lane.b32.xlu1 %v1539_v28, %s1763_s4 }
0x1bf3   :  { %v1541_v31 = vpop.eup %1540 }
0x1bf4   :  { %v1198_v32 = vadd.f32 1.0, %v1541_v31 }
0x1bf6   :  { %1542 = vrcp.f32 %v1198_v32  ;;  %v1210_v42 = vand.u32 2147483648, %v1198_v32  ;;  %vm1204_vm13 = vweird.f32 %v1198_v32  ;;  %v1208_v40 = vand.u32 2147483647, %v1198_v32 }
0x1bf8   :  { %v1211_v46 = vor.u32 1.1754944e-38, %v1210_v42  ;;  %vm1209_vm15 = vcmp.eq.f32.partialorder %v1208_v40, 8.507059e+37 }
0x1bfc   :  { %v1543_v33 = vpop.eup %1542 }
0x1bfd   :  { %v1200_v34 = vmul.f32 %v1543_v33, %v1198_v32  ;;  %vm1205_vm12 = vweird.f32 %v1543_v33 }
0x1bfe   :  { %vm1206_vm14 = vmor %vm1204_vm13, %vm1205_vm12 }
0x1bff   :  { %v1201_v35 = vsub.f32 1.0, %v1200_v34 }
0x1c01   :  { %v1202_v36 = vmul.f32 %v1543_v33, %v1201_v35 }
0x1c03   :  { %v1203_v37 = vadd.f32 %v1543_v33, %v1202_v36 }
0x1c05   :  { %v1207_v43 = vsel %vm1206_vm14, %v1543_v33, %v1203_v37 }
0x1c06   :  { %v1212_v47 = vsel %vm1209_vm15, %v1211_v46, %v1207_v43 }
0x1c07   :  { %v1215_v49 = vmul.f32 %v1212_v47, %v1158_v20 }
0x1c64   :  { %v1218_v45 = vpop.permute.xlu1 %1217 }
0x1c65   :  { %v1220_v48 = vmul.f32 %v1218_v45, %v1212_v47 }
0x1c67   :  { %1222 = vrot.lane.b32.xlu2 %v1220_v48, %s1763_s4 }
0x1cc1   :  { %v1223_v50 = vpop.permute.xlu2 %1222 }
0x1cc2   :  { %v1225_v51 = vadd.f32 %v1223_v50, %v1215_v49 }
0x1cc4   :  { %1544 = vtanh.f32 %v1225_v51 }
0x1cca   :  { %v1545_v38 = vpop.eup %1544 }
0x1ccb   :  { %1228 = vrot.lane.b32.xlu0 %v1545_v38, %s1763_s4 }
0x1d3d   :  { %v1229_v52 = vpop.permute.xlu0 %1228 }
0x1d3e   :  { %v1231_v53 = vmul.f32 %v1229_v52, %v1212_v47 }
0x1d40   :  { %1233 = vrot.lane.b32.xlu1 %v1231_v53, %s1764_s28 }
0x1db2   :  { %v1234_v54 = vpop.permute.xlu1 %1233 }
0x1db3   :  { %1236 = vst.msk [vmem:[#allocation12 + $0x30] sm:$0xff] %vm113_vm0, %v1234_v54  ;;  %1406 = vmatmul.msk.f32.vlgmr.msrb.gmra.mxu2 %vm113_vm0, %v1234_v54 }
0x1e36   :  { %v1258_v16 = vpop.f32.mrf.mxu2 }
0x1e37   :  { %v1261_v17 = vadd.f32 %v1258_v16, %v754_v55 }
0x1e39   :  { %1546 = vtanh.f32 %v1261_v17  ;;  %v1407_v19 = vmul.f32 -1.442695, %v1261_v17 }
0x1e3b   :  { %1548 = vpow2.f32 %v1407_v19 }
0x1e3f   :  { %v1547_v18 = vpop.eup %1546 }
0x1e40   :  { %1284 = vrot.lane.b32.xlu2 %v1547_v18, %s1763_s4 }
0x1e41   :  { %v1549_v56 = vpop.eup %1548 }
0x1e42   :  { %v1265_v57 = vadd.f32 1.0, %v1549_v56 }
0x1e44   :  { %1550 = vrcp.f32 %v1265_v57  ;;  %v1277_v63 = vand.u32 2147483648, %v1265_v57  ;;  %vm1271_vm2 = vweird.f32 %v1265_v57  ;;  %v1275_v44 = vand.u32 2147483647, %v1265_v57 }
0x1e46   :  { %v1278_v4 = vor.u32 1.1754944e-38, %v1277_v63  ;;  %vm1276_vm4 = vcmp.eq.f32.partialorder %v1275_v44, 8.507059e+37 }
0x1e4a   :  { %v1551_v58 = vpop.eup %1550 }
0x1e4b   :  { %v1267_v59 = vmul.f32 %v1551_v58, %v1265_v57  ;;  %vm1272_vm1 = vweird.f32 %v1551_v58 }
0x1e4c   :  { %vm1273_vm3 = vmor %vm1271_vm2, %vm1272_vm1 }
0x1e4d   :  { %v1268_v60 = vsub.f32 1.0, %v1267_v59 }
0x1e4f   :  { %v1269_v61 = vmul.f32 %v1551_v58, %v1268_v60 }
0x1e51   :  { %v1270_v62 = vadd.f32 %v1551_v58, %v1269_v61 }
0x1e53   :  { %v1274_v41 = vsel %vm1273_vm3, %v1551_v58, %v1270_v62 }
0x1e54   :  { %v1279_v6 = vsel %vm1276_vm4, %v1278_v4, %v1274_v41 }
0x1e55   :  { %v1282_v7 = vmul.f32 %v1279_v6, %v1225_v51 }
0x1e9a   :  { %v1285_v5 = vpop.permute.xlu2 %1284 }
0x1e9b   :  { %v1287_v0 = vmul.f32 %v1285_v5, %v1279_v6 }
0x1e9d   :  { %1289 = vrot.lane.b32.xlu0 %v1287_v0, %s1763_s4 }
0x1ea5   :  { %662 = vrot.lane.b32.xlu0 %v2011_v29, %s1765_s5 }
0x1f0f   :  { %v1290_v1 = vpop.permute.xlu0 %1289 }
0x1f10   :  { %v1292_v8 = vadd.f32 %v1290_v1, %v1282_v7 }
0x1f12   :  { %1552 = vtanh.f32 %v1292_v8 }
0x1f17   :  { %v663_v2 = vpop.permute.xlu0 %662 }
0x1f18   :  { %v1553_v3 = vpop.eup %1552  ;;  %665 = vst.msk [vmem:[#allocation15] sm:$0xff] %vm113_vm0, %v663_v2 }
0x1f19   :  { %1295 = vrot.lane.b32.xlu1 %v1553_v3, %s1763_s4 }
0x1f21   :  { %1307 = vrot.lane.b32.xlu1 %v1292_v8, %s1765_s5 }
0x1f8b   :  { %v1296_v39 = vpop.permute.xlu1 %1295 }
0x1f8c   :  { %v1298_v9 = vmul.f32 %v1296_v39, %v1279_v6 }
0x1f8e   :  { %1300 = vrot.lane.b32.xlu2 %v1298_v9, %s1764_s28 }
0x1f93   :  { %v1308_v10 = vpop.permute.xlu1 %1307 }
0x1f94   :  { %1311 = vst.msk [vmem:[#allocation15 + $0x8] sm:$0xff] %vm113_vm0, %v1308_v10 }
0x1fe8   :  { %v1301_v29 = vpop.permute.xlu2 %1300 }
0x1fe9   :  { %1303 = vst.msk [vmem:[#allocation12 + $0x38] sm:$0xff] %vm113_vm0, %v1301_v29 }
0x1fea   :  { %1305 = vst.msk [vmem:[#allocation13 + $0x8] sm:$0xff] %vm113_vm0, %v1301_v29  ;;  %1324 = dma.vmem_to_hbm [thread:$0]  %s1317_s10, 1024, %s1319_s15, [#allocation5], %s1757_s13, %s1757_s13, %s1758_s14  }
0x1feb   :  { %1337 = dma.vmem_to_hbm [thread:$0]  %s1330_s17, 256, %s1332_s3, [#allocation14], %s1757_s13, %s1757_s13, %s1758_s14  }
0x1fec   :  { %1350 = dma.vmem_to_hbm [thread:$0]  %s1343_s20, 256, %s1345_s23, [#allocation14], %s1757_s13, %s1757_s13, %s1758_s14  }
0x1fed   :  { %1752 = dma.done.wait [#allocation5], 1024  }
0x1fee   :  { %1753 = vsyncadd [#allocation5], 4294966272 }
0x1fef   :  { %1754 = dma.done.wait [#allocation14], 512  }
0x1ff0   :  { %1755 = vsyncadd [#allocation14], 4294966784 }
0x1ff1   :  { %1363 = vsyncpa [#allocation4], 1 }
0x1ff2   :  { %1364 = vsyncpa [#allocation7], 1 }
0x1ff3   :  { %1365 = vsyncpa [#allocation10], 1 }
0x1ff4   :  { %1366 = vsyncpa [#allocation5], 1 }
0x1ff5   :  { %1367 = vsyncpa [#allocation14], 1 }

</bundles_post_ra>
